<compile_context>
chip_gen: v7x
topology: tpu7x:2x2x1
jax: 0.10.0
libtpu: 0.0.40
codegen_flags: <defaults>
</compile_context>

<pallas_src>
import jax
import jax.numpy as jnp
import numpy as np
from jax.experimental import pallas as pl
from jax.experimental.pallas import tpu as pltpu

HIDDEN = 768   # BERT hidden size (fixed by Linear(768, 384))
INTER = 384    # regression head intermediate size


def _round_up(x, m):
    return ((x + m - 1) // m) * m


def _batch_tile(b_pad8):
    """Pick the batch tile: 128 on v5e, 256 on v6e/v7x; split on v7x to feed 2 TCs."""
    try:
        kind = jax.devices()[0].device_kind.lower()
    except Exception:  # pragma: no cover - defensive; assume modern TPU
        kind = ""
    cap = 128 if "v5" in kind else 256
    tb = min(b_pad8, cap)
    # v7x has 2 TensorCores/chip: ensure >= 2 batch tiles when the batch allows,
    # so the "parallel" grid axis shards across both cores.
    if "v7" in kind and b_pad8 <= cap and b_pad8 >= 16:
        tb = _round_up((b_pad8 + 1) // 2, 8)
    return tb


# ---------------------------------------------------------------------------
# Fused kernel (one grid step per batch tile, weights fully resident):
#   enc = tanh(cls_emb @ W_enc + b_enc) * mask_cls
#   h1  = relu(enc @ W1 + b1)
#   y   = sum(h1 * w2_row, -1) + b2
# ---------------------------------------------------------------------------
def fused_cls_head_kernel(cls_emb_ref, w_enc_ref, b_enc_ref, w1_ref, b1_ref,
                          w2_ref, mask_ref, b2_ref, o_ref):
    # MXU: bf16 operands, f32 accumulation.  Full 768x768 encoder matmul in
    # one shot (weights are resident in VMEM across all batch tiles).
    enc = jnp.dot(cls_emb_ref[...], w_enc_ref[...],
                  preferred_element_type=jnp.float32)              # (TB, H) f32
    h = jnp.tanh(enc + b_enc_ref[...])                             # f32 (EUP)
    h = h * mask_ref[...]                                          # CLS 0/1 mask

    # linear1: full-K matmul, f32 accumulate; bias + ReLU in f32 on the VPU.
    x1 = jnp.dot(h.astype(jnp.bfloat16), w1_ref[...],
                 preferred_element_type=jnp.float32) + b1_ref[...]  # (TB, INTER)
    h1 = jnp.maximum(x1, 0.0)

    # linear2 has N=1: VPU multiply + cross-lane reduce; b2 scalar from SMEM.
    y = jnp.sum(h1 * w2_ref[...], axis=-1, keepdims=True) + b2_ref[0, 0]
    o_ref[...] = y


def regression_based_bert_forward(ids, mask, prep):
    """Full forward: synthetic embedding model (CLS row only) + regression head.

    `prep` is produced once by prepare_inference_params() (bf16 weights etc.).
    """
    B = ids.shape[0]

    # XLA glue: CLS-row embedding lookup only (B rows).
    # TODO(synk): at large batch, fuse this gather + pos add + bf16 cast into
    # the kernel via PrefetchScalarGridSpec + pl.Element row gather; at small B
    # the XLA gather is already tiny.
    cls_emb = (jnp.take(prep["emb_table"], ids[:, 0], axis=0)
               + prep["pos_emb"][0][None, :])                      # (B, H) f32
    mask_cls = mask[:, 0].astype(jnp.float32)[:, None]             # (B, 1)

    # Pad batch to a sublane-friendly / MXU-friendly tile.
    B_pad8 = _round_up(B, 8)
    TB = _batch_tile(B_pad8)
    B_pad = _round_up(B, TB)
    cls_emb = jnp.pad(cls_emb, ((0, B_pad - B), (0, 0)))
    mask_cls = jnp.pad(mask_cls, ((0, B_pad - B), (0, 0)))
    cls_emb_bf = cls_emb.astype(jnp.bfloat16)

    grid = (B_pad // TB,)

    out = pl.pallas_call(
        fused_cls_head_kernel,
        out_shape=jax.ShapeDtypeStruct((B_pad, 1), jnp.float32),
        grid_spec=pltpu.PrefetchScalarGridSpec(
            num_scalar_prefetch=0,
            grid=grid,
            in_specs=[
                pl.BlockSpec((TB, HIDDEN), lambda i: (i, 0)),       # cls_emb (bf16)
                pl.BlockSpec((HIDDEN, HIDDEN), lambda i: (0, 0)),   # W_enc   (bf16)
                pl.BlockSpec((1, HIDDEN), lambda i: (0, 0)),        # b_enc   (f32)
                pl.BlockSpec((HIDDEN, INTER), lambda i: (0, 0)),    # W1      (bf16)
                pl.BlockSpec((1, INTER), lambda i: (0, 0)),         # b1      (f32)
                pl.BlockSpec((1, INTER), lambda i: (0, 0)),         # w2 row  (f32)
                pl.BlockSpec((TB, 1), lambda i: (i, 0)),            # CLS mask (f32)
                pl.BlockSpec(memory_space=pltpu.MemorySpace.SMEM),  # b2 scalar
            ],
            out_specs=pl.BlockSpec((TB, 1), lambda i: (i, 0)),
        ),
        compiler_params=pltpu.CompilerParams(
            dimension_semantics=("parallel",)),
    )(cls_emb_bf, prep["w_enc_bf16"], prep["b_enc"], prep["w1_bf16"],
      prep["b1"], prep["w2_row"], mask_cls, prep["b2"])

    return out[:B]


def reference_forward(ids, mask, params):
    """Pure-JAX reference at matching (bf16-operand / f32-accumulate) precision."""
    cls_emb = (jnp.take(params["emb_table"], ids[:, 0], axis=0)
               + params["pos_emb"][0][None, :])
    enc = jnp.dot(cls_emb.astype(jnp.bfloat16),
                  params["w_enc"].astype(jnp.bfloat16),
                  preferred_element_type=jnp.float32)
    h = jnp.tanh(enc + params["b_enc"])
    h = h * mask[:, 0].astype(jnp.float32)[:, None]                # CLS row of mask
    x = jnp.dot(h.astype(jnp.bfloat16), params["w1"].astype(jnp.bfloat16),
                preferred_element_type=jnp.float32) + params["b1"]
    x = jnp.maximum(x, 0.0)
    return x @ params["w2"] + params["b2"]


# ---------------------------------------------------------------------------
# Deterministic parameter construction (synthetic; no checkpoint load)
# ---------------------------------------------------------------------------
def make_params(vocab, seq_len):
    ks = jax.random.split(jax.random.PRNGKey(0), 8)
    f32 = jnp.float32
    return {
        "emb_table": jax.random.normal(ks[0], (vocab, HIDDEN), f32) * 0.02,
        "pos_emb":   jax.random.normal(ks[1], (seq_len, HIDDEN), f32) * 0.02,
        "w_enc":     jax.random.normal(ks[2], (HIDDEN, HIDDEN), f32) / np.sqrt(HIDDEN),
        "b_enc":     jax.random.normal(ks[3], (1, HIDDEN), f32) * 0.01,
        "w1":        jax.random.normal(ks[4], (HIDDEN, INTER), f32) / np.sqrt(HIDDEN),
        "b1":        jax.random.normal(ks[5], (1, INTER), f32) * 0.01,
        "w2":        jax.random.normal(ks[6], (INTER, 1), f32) / np.sqrt(INTER),
        "b2":        jax.random.normal(ks[7], (1, 1), f32) * 0.01,
    }


def prepare_inference_params(params):
    """One-time weight prep (bf16 casts, w2 transpose) OUTSIDE the per-call path."""
    return {
        "emb_table": params["emb_table"],
        "pos_emb":   params["pos_emb"],
        "w_enc_bf16": params["w_enc"].astype(jnp.bfloat16),
        "b_enc":     params["b_enc"],
        "w1_bf16":   params["w1"].astype(jnp.bfloat16),
        "b1":        params["b1"],
        "w2_row":    params["w2"].T,          # (1, INTER) f32
        "b2":        params["b2"],            # (1, 1) f32, lives in SMEM
    }


if __name__ == "__main__":
    B, S, VOCAB = 2, 8, 64

    key = jax.random.PRNGKey(0)
    k_ids, _ = jax.random.split(key)
    ids = jax.random.randint(k_ids, (B, S), 0, VOCAB, dtype=jnp.int32)
    # Attention mask: first sequence fully valid, second padded after 5 tokens.
    # (CLS position is always valid -> lengths >= 1.)
    lengths = jnp.array([S, 5], dtype=jnp.int32)
    mask = (jnp.arange(S, dtype=jnp.int32)[None, :] < lengths[:, None]).astype(jnp.int32)

    params = make_params(VOCAB, S)
    prep = prepare_inference_params(params)               # computed once
    prep = jax.tree_util.tree_map(jax.block_until_ready, prep)

    out = regression_based_bert_forward(ids, mask, prep)
    out = jax.block_until_ready(out)

    ref = jax.block_until_ready(reference_forward(ids, mask, params))
    assert out.shape == (B, 1), out.shape
    np.testing.assert_allclose(np.asarray(out), np.asarray(ref),
                               rtol=1e-3, atol=1e-4)

    print("KERNEL_OK")
</pallas_src>

<mosaic_0001>
module attributes {stable_mosaic.version = 11 : i64} {
  func.func @fused_cls_head_kernel(%arg0: i32, %arg1: memref<8x768xbf16, #tpu.memory_space<vmem>>, %arg2: memref<768x768xbf16, #tpu.memory_space<vmem>>, %arg3: memref<1x768xf32, #tpu.memory_space<vmem>>, %arg4: memref<768x384xbf16, #tpu.memory_space<vmem>>, %arg5: memref<1x384xf32, #tpu.memory_space<vmem>>, %arg6: memref<1x384xf32, #tpu.memory_space<vmem>>, %arg7: memref<8x1xf32, #tpu.memory_space<vmem>>, %arg8: memref<1x1xf32, #tpu.memory_space<smem>>, %arg9: memref<8x1xf32, #tpu.memory_space<vmem>>) attributes {dimension_semantics = [#tpu.dimension_semantics<parallel>], iteration_bounds = array<i64: 1>, scalar_prefetch = 0 : i64, scratch_operands = 0 : i64, tpu.core_type = #tpu.core_type<tc>, window_params = [{transform_indices = @transform_0, window_bounds = array<i64: 8, 768>}, {pipeline_mode = #tpu.pipeline_mode<synchronous>, transform_indices = @transform_1, window_bounds = array<i64: 768, 768>}, {pipeline_mode = #tpu.pipeline_mode<synchronous>, transform_indices = @transform_2, window_bounds = array<i64: 1, 768>}, {pipeline_mode = #tpu.pipeline_mode<synchronous>, transform_indices = @transform_3, window_bounds = array<i64: 768, 384>}, {pipeline_mode = #tpu.pipeline_mode<synchronous>, transform_indices = @transform_4, window_bounds = array<i64: 1, 384>}, {pipeline_mode = #tpu.pipeline_mode<synchronous>, transform_indices = @transform_5, window_bounds = array<i64: 1, 384>}, {transform_indices = @transform_6, window_bounds = array<i64: 8, 1>}, {transform_indices = @transform_7, window_bounds = array<i64: 1, 1>}, {transform_indices = @transform_8, window_bounds = array<i64: 8, 1>}]} {
    %c0 = arith.constant 0 : index
    %c0_0 = arith.constant 0 : index
    %0 = vector.load %arg1[%c0, %c0_0] : memref<8x768xbf16, #tpu.memory_space<vmem>>, vector<8x768xbf16>
    %c0_1 = arith.constant 0 : index
    %c0_2 = arith.constant 0 : index
    %1 = vector.load %arg2[%c0_1, %c0_2] : memref<768x768xbf16, #tpu.memory_space<vmem>>, vector<768x768xbf16>
    %cst = arith.constant dense<0.000000e+00> : vector<8x768xf32>
    %2 = tpu.matmul %0, %1, %cst {dimension_numbers = #tpu.dot_dimension_numbers<[1], [0], [0], [1], [0, 0, 1, 1], [], []>} : vector<8x768xbf16>, vector<768x768xbf16>, vector<8x768xf32> -> vector<8x768xf32>
    %c0_3 = arith.constant 0 : index
    %c0_4 = arith.constant 0 : index
    %3 = vector.load %arg3[%c0_3, %c0_4] : memref<1x768xf32, #tpu.memory_space<vmem>>, vector<1x768xf32>
    %4 = vector.broadcast %3 : vector<1x768xf32> to vector<8x768xf32>
    %5 = arith.addf %2, %4 : vector<8x768xf32>
    %6 = math.tanh %5 : vector<8x768xf32>
    %c0_5 = arith.constant 0 : index
    %c0_6 = arith.constant 0 : index
    %7 = vector.load %arg7[%c0_5, %c0_6] : memref<8x1xf32, #tpu.memory_space<vmem>>, vector<8x1xf32>
    %8 = vector.broadcast %7 : vector<8x1xf32> to vector<8x768xf32>
    %9 = arith.mulf %6, %8 : vector<8x768xf32>
    %10 = arith.truncf %9 : vector<8x768xf32> to vector<8x768xbf16>
    %c0_7 = arith.constant 0 : index
    %c0_8 = arith.constant 0 : index
    %11 = vector.load %arg4[%c0_7, %c0_8] : memref<768x384xbf16, #tpu.memory_space<vmem>>, vector<768x384xbf16>
    %cst_9 = arith.constant dense<0.000000e+00> : vector<8x384xf32>
    %12 = tpu.matmul %10, %11, %cst_9 {dimension_numbers = #tpu.dot_dimension_numbers<[1], [0], [0], [1], [0, 0, 1, 1], [], []>} : vector<8x768xbf16>, vector<768x384xbf16>, vector<8x384xf32> -> vector<8x384xf32>
    %c0_10 = arith.constant 0 : index
    %c0_11 = arith.constant 0 : index
    %13 = vector.load %arg5[%c0_10, %c0_11] : memref<1x384xf32, #tpu.memory_space<vmem>>, vector<1x384xf32>
    %14 = vector.broadcast %13 : vector<1x384xf32> to vector<8x384xf32>
    %15 = arith.addf %12, %14 : vector<8x384xf32>
    %cst_12 = arith.constant 0.000000e+00 : f32
    %16 = vector.broadcast %cst_12 : f32 to vector<8x384xf32>
    %17 = arith.maximumf %15, %16 : vector<8x384xf32>
    %c0_13 = arith.constant 0 : index
    %c0_14 = arith.constant 0 : index
    %18 = vector.load %arg6[%c0_13, %c0_14] : memref<1x384xf32, #tpu.memory_space<vmem>>, vector<1x384xf32>
    %19 = vector.broadcast %18 : vector<1x384xf32> to vector<8x384xf32>
    %20 = arith.mulf %17, %19 : vector<8x384xf32>
    %cst_15 = arith.constant dense<0.000000e+00> : vector<8xf32>
    %21 = vector.multi_reduction <add>, %20, %cst_15 [1] : vector<8x384xf32> to vector<8xf32>
    %22 = vector.shape_cast %21 : vector<8xf32> to vector<8x1xf32>
    %c0_16 = arith.constant 0 : index
    %c0_17 = arith.constant 0 : index
    %23 = memref.load %arg8[%c0_16, %c0_17] : memref<1x1xf32, #tpu.memory_space<smem>>
    %24 = vector.broadcast %23 : f32 to vector<8x1xf32>
    %25 = arith.addf %22, %24 : vector<8x1xf32>
    %c0_18 = arith.constant 0 : index
    %c0_19 = arith.constant 0 : index
    %26 = vector.load %arg9[%c0_18, %c0_19] : memref<8x1xf32, #tpu.memory_space<vmem>>, vector<8x1xf32>
    tpu.vector_store %arg9[%c0_18, %c0_19], %25 {strides = array<i32>} : memref<8x1xf32, #tpu.memory_space<vmem>>, vector<8x1xf32>,
    return
  }
  func.func @transform_0(%arg0: i32) -> (i32, i32) {
    %c0_i32 = arith.constant 0 : i32
    %c0_i32_0 = arith.constant 0 : i32
    return %arg0, %c0_i32 : i32, i32
  }
  func.func @transform_1(%arg0: i32) -> (i32, i32) {
    %c0_i32 = arith.constant 0 : i32
    %c0_i32_0 = arith.constant 0 : i32
    %c0_i32_1 = arith.constant 0 : i32
    return %c0_i32, %c0_i32_0 : i32, i32
  }
  func.func @transform_2(%arg0: i32) -> (i32, i32) {
    %c0_i32 = arith.constant 0 : i32
    %c0_i32_0 = arith.constant 0 : i32
    %c0_i32_1 = arith.constant 0 : i32
    return %c0_i32, %c0_i32_0 : i32, i32
  }
  func.func @transform_3(%arg0: i32) -> (i32, i32) {
    %c0_i32 = arith.constant 0 : i32
    %c0_i32_0 = arith.constant 0 : i32
    %c0_i32_1 = arith.constant 0 : i32
    return %c0_i32, %c0_i32_0 : i32, i32
  }
  func.func @transform_4(%arg0: i32) -> (i32, i32) {
    %c0_i32 = arith.constant 0 : i32
    %c0_i32_0 = arith.constant 0 : i32
    %c0_i32_1 = arith.constant 0 : i32
    return %c0_i32, %c0_i32_0 : i32, i32
  }
  func.func @transform_5(%arg0: i32) -> (i32, i32) {
    %c0_i32 = arith.constant 0 : i32
    %c0_i32_0 = arith.constant 0 : i32
    %c0_i32_1 = arith.constant 0 : i32
    return %c0_i32, %c0_i32_0 : i32, i32
  }
  func.func @transform_6(%arg0: i32) -> (i32, i32) {
    %c0_i32 = arith.constant 0 : i32
    %c0_i32_0 = arith.constant 0 : i32
    return %arg0, %c0_i32 : i32, i32
  }
  func.func @transform_7(%arg0: i32) -> (i32, i32) {
    %c0_i32 = arith.constant 0 : i32
    %c0_i32_0 = arith.constant 0 : i32
    %c0_i32_1 = arith.constant 0 : i32
    return %c0_i32, %c0_i32_0 : i32, i32
  }
  func.func @transform_8(%arg0: i32) -> (i32, i32) {
    %c0_i32 = arith.constant 0 : i32
    %c0_i32_0 = arith.constant 0 : i32
    return %arg0, %c0_i32 : i32, i32
  }
}

</mosaic_0001>

<bundles_post_ra>
// kernel: tpu_custom_call.1
= control target key start
LH: loop header
LB: loop body
LE: loop exit
PB: predicated region body
PF: predicated region fallthrough
CT: control target
= control target key end

     0   :  { %14 = vsyncpa [#allocation4], 0  ;;  %s5109_s0 = inlined_call_operand.hbm [shape: bf16[8,768], index: 0, kind: input, shape index: {}]   ;;  %s5110_s1 = inlined_call_operand.hbm [shape: bf16[768,768], index: 1, kind: input, shape index: {}]   ;;  %s5111_s2 = inlined_call_operand.hbm [shape: f32[1,768], index: 2, kind: input, shape index: {}]   ;;  %s5112_s3 = inlined_call_operand.hbm [shape: bf16[768,384], index: 3, kind: input, shape index: {}]   ;;  %s5113_s4 = inlined_call_operand.hbm [shape: f32[1,384], index: 4, kind: input, shape index: {}]   ;;  %s5114_s5 = inlined_call_operand.hbm [shape: f32[1,384], index: 5, kind: input, shape index: {}]   ;;  %s5115_s6 = inlined_call_operand.vmem [shape: f32[8,1], index: 6, kind: input, shape index: {}]   ;;  %s5116_s7 = inlined_call_operand.<no memory space> [shape: f32[1,1], index: 7, kind: input, shape index: {}]   ;;  %s5117_s8 = inlined_call_operand.vmem [shape: f32[8,1], index: 8, kind: output, shape index: {}]  }
   0x1   :  { %15 = vsyncpa [#allocation6], 0 }
   0x2   :  { %16 = vsyncpa [#allocation9], 0 }
   0x3   :  { %17 = vsyncpa [#allocation12], 0  ;;  %s4880_s27 = smov [#allocation5]   ;;  %s4740_s9 = scalar_lea.hbm %s5110_s1, 36864 }
   0x4   :  { %s33_s28 = sshll.u32 %s4880_s27, 4  ;;  %p4741_p0 = scmp.ne.s32.totalorder %s5110_s1, %s4740_s9  ;;  %s34_s28 = int_to_ptr.vmem [resolvable:$true] %s33_s28 }
   0x5   :  { %p4744_p1 = scmp.lt.u32.totalorder %s4740_s9, %s5110_s1 }
   0x7   :  { %p4746_p2 = pnand %p4744_p1, %p4741_p0 }
   0x9   :  { %4749 = shalt.err (!%p4746_p2)
}
   0xa   :  { %s4750_s14 = scalar_lea.vmem %s34_s28, 36864  ;;  %p4755_p4 = scmp.lt.s32.totalorder %s34_s28, %s34_s28 }
   0xb   :  { %p4751_p3 = scmp.ne.s32.totalorder %s34_s28, %s4750_s14  ;;  %p4756_p5 = scmp.lt.s32.totalorder %s4750_s14, %s4750_s14 }
   0xd   :  { %p4757_p6 = por %p4756_p5, %p4755_p4 }
   0xf   :  { %p4758_p7 = pnand %p4757_p6, %p4751_p3 }
  0x11   :  { %4761 = shalt.err (!%p4758_p7)
}
  0x12   :  { %s4881_s15 = smov 384   ;;  %s4882_s16 = smov 24  }
  0x13   :  { %39 = dma.hbm_to_vmem [thread:$0]  %s5110_s1, 36864, %s34_s28, [#allocation6], %s4881_s15, %s4881_s15, %s4882_s16  }
  0x14   :  { %s4883_s19 = smov [#allocation8]   ;;  %s4762_s23 = scalar_lea.hbm %s5112_s3, 18432 }
  0x15   :  { %s55_s20 = sshll.u32 %s4883_s19, 4  ;;  %p4763_p8 = scmp.ne.s32.totalorder %s5112_s3, %s4762_s23  ;;  %s56_s20 = int_to_ptr.vmem [resolvable:$true] %s55_s20 }
  0x16   :  { %p4766_p9 = scmp.lt.u32.totalorder %s4762_s23, %s5112_s3 }
  0x18   :  { %p4768_p10 = pnand %p4766_p9, %p4763_p8 }
  0x1a   :  { %4771 = shalt.err (!%p4768_p10)
}
  0x1b   :  { %s4772_s29 = scalar_lea.vmem %s56_s20, 18432  ;;  %p4777_p12 = scmp.lt.s32.totalorder %s56_s20, %s56_s20 }
  0x1c   :  { %p4773_p11 = scmp.ne.s32.totalorder %s56_s20, %s4772_s29  ;;  %p4778_p13 = scmp.lt.s32.totalorder %s4772_s29, %s4772_s29 }
  0x1e   :  { %p4779_p0 = por %p4778_p13, %p4777_p12 }
  0x20   :  { %p4780_p1 = pnand %p4779_p0, %p4773_p11 }
  0x22   :  { %4783 = shalt.err (!%p4780_p1)
}
  0x23   :  { %s4884_s1 = smov 192   ;;  %s4885_s28 = smov 12  }
  0x24   :  { %61 = dma.hbm_to_vmem [thread:$0]  %s5112_s3, 18432, %s56_s20, [#allocation9], %s4884_s1, %s4884_s1, %s4885_s28  }
  0x25   :  { %s4886_s10 = smov [#allocation3]   ;;  %s4887_s12 = smov [#allocation7]  }
  0x26   :  { %s24_s11 = sshll.u32 %s4886_s10, 4  ;;  %s46_s13 = sshll.u32 %s4887_s12, 4  ;;  %s25_s11 = int_to_ptr.vmem [resolvable:$true] %s24_s11  ;;  %s47_s13 = int_to_ptr.vmem [resolvable:$true] %s46_s13 }
  0x27   :  { %s4784_s16 = scalar_lea.hbm %s5109_s0, 384 }
  0x28   :  { %p4785_p2 = scmp.ne.s32.totalorder %s5109_s0, %s4784_s16  ;;  %p4788_p3 = scmp.lt.u32.totalorder %s4784_s16, %s5109_s0 }
  0x2a   :  { %p4790_p4 = pnand %p4788_p3, %p4785_p2 }
  0x2c   :  { %4793 = shalt.err (!%p4790_p4)
}
  0x2d   :  { %s4794_s3 = scalar_lea.vmem %s25_s11, 384  ;;  %p4799_p6 = scmp.lt.s32.totalorder %s25_s11, %s25_s11 }
  0x2e   :  { %p4795_p5 = scmp.ne.s32.totalorder %s25_s11, %s4794_s3  ;;  %p4800_p7 = scmp.lt.s32.totalorder %s4794_s3, %s4794_s3 }
  0x30   :  { %p4801_p8 = por %p4800_p7, %p4799_p6 }
  0x32   :  { %p4802_p9 = pnand %p4801_p8, %p4795_p5 }
  0x34   :  { %4805 = shalt.err (!%p4802_p9)
}
  0x35   :  { %27 = dma.hbm_to_vmem [thread:$0]  %s5109_s0, 384, %s25_s11, [#allocation4]  }
  0x36   :  { %s4806_s25 = scalar_lea.hbm %s5111_s2, 96 }
  0x37   :  { %p4807_p10 = scmp.ne.s32.totalorder %s5111_s2, %s4806_s25  ;;  %p4810_p11 = scmp.lt.u32.totalorder %s4806_s25, %s5111_s2 }
  0x39   :  { %p4812_p12 = pnand %p4810_p11, %p4807_p10 }
  0x3b   :  { %4815 = shalt.err (!%p4812_p12)
}
  0x3c   :  { %s4816_s28 = scalar_lea.vmem %s47_s13, 96  ;;  %p4821_p0 = scmp.lt.s32.totalorder %s47_s13, %s47_s13 }
  0x3d   :  { %p4817_p13 = scmp.ne.s32.totalorder %s47_s13, %s4816_s28  ;;  %p4822_p1 = scmp.lt.s32.totalorder %s4816_s28, %s4816_s28 }
  0x3f   :  { %p4823_p2 = por %p4822_p1, %p4821_p0 }
  0x41   :  { %p4824_p3 = pnand %p4823_p2, %p4817_p13 }
  0x43   :  { %4827 = shalt.err (!%p4824_p3)
}
  0x44   :  { %49 = dma.hbm_to_vmem [thread:$0]  %s5111_s2, 96, %s47_s13, [#allocation6]  }
  0x45   :  { %s4888_s9 = smov [#allocation10]   ;;  %s4889_s11 = smov [#allocation11]  }
  0x46   :  { %s68_s10 = sshll.u32 %s4888_s9, 4  ;;  %s78_s12 = sshll.u32 %s4889_s11, 4  ;;  %s69_s10 = int_to_ptr.vmem [resolvable:$true] %s68_s10  ;;  %s79_s12 = int_to_ptr.vmem [resolvable:$true] %s78_s12 }
  0x47   :  { %s4828_s16 = scalar_lea.hbm %s5113_s4, 48 }
  0x48   :  { %p4829_p4 = scmp.ne.s32.totalorder %s5113_s4, %s4828_s16  ;;  %p4832_p5 = scmp.lt.u32.totalorder %s4828_s16, %s5113_s4 }
  0x4a   :  { %p4834_p6 = pnand %p4832_p5, %p4829_p4 }
  0x4c   :  { %4837 = shalt.err (!%p4834_p6)
}
  0x4d   :  { %s4838_s2 = scalar_lea.vmem %s69_s10, 48  ;;  %s4842_s13 = scalar_lea.vmem %s69_s10, 64 }
  0x4e   :  { %p4839_p7 = scmp.ne.s32.totalorder %s69_s10, %s4838_s2  ;;  %p4843_p8 = scmp.lt.s32.totalorder %s69_s10, %s69_s10 }
  0x4f   :  { %p4844_p9 = scmp.lt.s32.totalorder %s4842_s13, %s4838_s2 }
  0x51   :  { %p4845_p10 = por %p4844_p9, %p4843_p8 }
  0x53   :  { %p4846_p11 = pnand %p4845_p10, %p4839_p7 }
  0x55   :  { %4849 = shalt.err (!%p4846_p11)
}
  0x56   :  { %71 = dma.hbm_to_vmem [thread:$0]  %s5113_s4, 48, %s69_s10, [#allocation9]  }
  0x57   :  { %s4850_s24 = scalar_lea.hbm %s5114_s5, 48 }
  0x58   :  { %p4851_p12 = scmp.ne.s32.totalorder %s5114_s5, %s4850_s24  ;;  %p4854_p13 = scmp.lt.u32.totalorder %s4850_s24, %s5114_s5 }
  0x5a   :  { %p4856_p0 = pnand %p4854_p13, %p4851_p12 }
  0x5c   :  { %4859 = shalt.err (!%p4856_p0)
}
  0x5d   :  { %s4860_s1 = scalar_lea.vmem %s79_s12, 48  ;;  %s4864_s28 = scalar_lea.vmem %s79_s12, 64 }
  0x5e   :  { %p4861_p1 = scmp.ne.s32.totalorder %s79_s12, %s4860_s1  ;;  %p4865_p2 = scmp.lt.s32.totalorder %s79_s12, %s79_s12 }
  0x5f   :  { %p4866_p3 = scmp.lt.s32.totalorder %s4864_s28, %s4860_s1 }
  0x61   :  { %p4867_p4 = por %p4866_p3, %p4865_p2 }
  0x63   :  { %p4868_p5 = pnand %p4867_p4, %p4861_p1 }
  0x65   :  { %4871 = shalt.err (!%p4868_p5)
}
  0x66   :  { %81 = dma.hbm_to_vmem [thread:$0]  %s5114_s5, 48, %s79_s12, [#allocation12]  }
  0x67   :  { %4872 = dma.done.wait [#allocation4], 384  }
  0x68   :  { %4873 = vsyncadd [#allocation4], 4294966912 }
  0x69   :  { %4874 = dma.done.wait [#allocation6], 36960  }
  0x6a   :  { %4875 = vsyncadd [#allocation6], 4294930336 }
  0x6b   :  { %4876 = dma.done.wait [#allocation9], 18480  }
  0x6c   :  { %4877 = vsyncadd [#allocation9], 4294948816 }
  0x6d   :  { %4878 = dma.done.wait [#allocation12], 48  }
  0x6e   :  { %4879 = vsyncadd [#allocation12], 4294967248  ;;  %v4098_v0 = vld [vmem:[#allocation5 + $0x4] ss:$24 sps:$4 sm:$0xff]   ;;  %v4102_v2 = vld [vmem:[#allocation5] ss:$24 sps:$4 sm:$0xff]  }
  0x6f   :  { %v4100_v1 = vld [vmem:[#allocation5 + $0xc] ss:$24 sps:$4 sm:$0xff]   ;;  %1889 = vmatprep.subr.bf16.mxu0 %v4098_v0  ;;  %v4103_v3 = vld [vmem:[#allocation5 + $0x8] ss:$24 sps:$4 sm:$0xff]   ;;  %v4106_v5 = vld [vmem:[#allocation5 + $0x3c] ss:$24 sps:$4 sm:$0xff]  }
  0x70   :  { %2012 = vmatprep.subr.bf16.mxu1 %v4100_v1  ;;  %v4104_v4 = vld [vmem:[#allocation5 + $0x34] ss:$24 sps:$4 sm:$0xff]   ;;  %1890 = vmatpush1.bf16.msra.mxu0 %v4102_v2  ;;  %v4108_v6 = vld [vmem:[#allocation5 + $0x30] ss:$24 sps:$4 sm:$0xff]   ;;  %v4110_v8 = vld [vmem:[#allocation5 + $0x64] ss:$24 sps:$4 sm:$0xff]  }
  0x71   :  { %2013 = vmatpush1.bf16.msra.mxu1 %v4103_v3  ;;  %1891 = vmatprep.subr.bf16.mxu0 %v4104_v4  ;;  %v4109_v7 = vld [vmem:[#allocation5 + $0x38] ss:$24 sps:$4 sm:$0xff]   ;;  %v4112_v9 = vld [vmem:[#allocation5 + $0x6c] ss:$24 sps:$4 sm:$0xff]   ;;  %v4115_v11 = vld [vmem:[#allocation5 + $0x68] ss:$24 sps:$4 sm:$0xff]  }
  0x72   :  { %2014 = vmatprep.subr.bf16.mxu1 %v4106_v5  ;;  %v4114_v10 = vld [vmem:[#allocation5 + $0x60] ss:$24 sps:$4 sm:$0xff]   ;;  %v4116_v12 = vld [vmem:[#allocation5 + $0x94] ss:$24 sps:$4 sm:$0xff]   ;;  %v4120_v14 = vld [vmem:[#allocation5 + $0x90] ss:$24 sps:$4 sm:$0xff]  }
  0x73   :  { %v4118_v13 = vld [vmem:[#allocation5 + $0x9c] ss:$24 sps:$4 sm:$0xff]   ;;  %v4121_v15 = vld [vmem:[#allocation5 + $0x98] ss:$24 sps:$4 sm:$0xff]   ;;  %v4124_v17 = vld [vmem:[#allocation5 + $0xcc] ss:$24 sps:$4 sm:$0xff]  }
  0x74   :  { %1892 = vmatpush1.bf16.msra.mxu0 %v4108_v6  ;;  %v4122_v16 = vld [vmem:[#allocation5 + $0xc4] ss:$24 sps:$4 sm:$0xff]   ;;  %v4126_v18 = vld [vmem:[#allocation5 + $0xc0] ss:$24 sps:$4 sm:$0xff]   ;;  %v4128_v20 = vld [vmem:[#allocation5 + $0xf4] ss:$24 sps:$4 sm:$0xff]  }
  0x75   :  { %2015 = vmatpush1.bf16.msra.mxu1 %v4109_v7  ;;  %1893 = vmatprep.subr.bf16.mxu0 %v4110_v8  ;;  %v4127_v19 = vld [vmem:[#allocation5 + $0xc8] ss:$24 sps:$4 sm:$0xff]   ;;  %v4130_v21 = vld [vmem:[#allocation5 + $0xfc] ss:$24 sps:$4 sm:$0xff]   ;;  %v4133_v23 = vld [vmem:[#allocation5 + $0xf8] ss:$24 sps:$4 sm:$0xff]  }
  0x76   :  { %2016 = vmatprep.subr.bf16.mxu1 %v4112_v9  ;;  %v4132_v22 = vld [vmem:[#allocation5 + $0xf0] ss:$24 sps:$4 sm:$0xff]   ;;  %v4134_v24 = vld [vmem:[#allocation5 + $0x124] ss:$24 sps:$4 sm:$0xff]   ;;  %v4138_v26 = vld [vmem:[#allocation5 + $0x120] ss:$24 sps:$4 sm:$0xff]  }
  0x77   :  { %v4136_v25 = vld [vmem:[#allocation5 + $0x12c] ss:$24 sps:$4 sm:$0xff]   ;;  %v4139_v27 = vld [vmem:[#allocation5 + $0x128] ss:$24 sps:$4 sm:$0xff]   ;;  %v4142_v29 = vld [vmem:[#allocation5 + $0x15c] ss:$24 sps:$4 sm:$0xff]  }
  0x78   :  { %1894 = vmatpush1.bf16.msra.mxu0 %v4114_v10  ;;  %v4140_v28 = vld [vmem:[#allocation5 + $0x154] ss:$24 sps:$4 sm:$0xff]   ;;  %v4144_v30 = vld [vmem:[#allocation5 + $0x150] ss:$24 sps:$4 sm:$0xff]   ;;  %v4146_v32 = vld [vmem:[#allocation5 + $0x184] ss:$24 sps:$4 sm:$0xff]  }
  0x79   :  { %2017 = vmatpush1.bf16.msra.mxu1 %v4115_v11  ;;  %1895 = vmatprep.subr.bf16.mxu0 %v4116_v12  ;;  %v4145_v31 = vld [vmem:[#allocation5 + $0x158] ss:$24 sps:$4 sm:$0xff]   ;;  %v4148_v33 = vld [vmem:[#allocation5 + $0x18c] ss:$24 sps:$4 sm:$0xff]   ;;  %v4151_v35 = vld [vmem:[#allocation5 + $0x188] ss:$24 sps:$4 sm:$0xff]  }
  0x7a   :  { %2018 = vmatprep.subr.bf16.mxu1 %v4118_v13  ;;  %v4150_v34 = vld [vmem:[#allocation5 + $0x180] ss:$24 sps:$4 sm:$0xff]   ;;  %v4152_v36 = vld [vmem:[#allocation5 + $0x1b4] ss:$24 sps:$4 sm:$0xff]   ;;  %v4156_v38 = vld [vmem:[#allocation5 + $0x1b0] ss:$24 sps:$4 sm:$0xff]  }
  0x7b   :  { %v4154_v37 = vld [vmem:[#allocation5 + $0x1bc] ss:$24 sps:$4 sm:$0xff]   ;;  %v4157_v39 = vld [vmem:[#allocation5 + $0x1b8] ss:$24 sps:$4 sm:$0xff]   ;;  %v4160_v41 = vld [vmem:[#allocation5 + $0x1ec] ss:$24 sps:$4 sm:$0xff]  }
  0x7c   :  { %1896 = vmatpush1.bf16.msra.mxu0 %v4120_v14  ;;  %v4158_v40 = vld [vmem:[#allocation5 + $0x1e4] ss:$24 sps:$4 sm:$0xff]   ;;  %v4162_v42 = vld [vmem:[#allocation5 + $0x1e0] ss:$24 sps:$4 sm:$0xff]   ;;  %v4164_v44 = vld [vmem:[#allocation5 + $0x214] ss:$24 sps:$4 sm:$0xff]  }
  0x7d   :  { %2019 = vmatpush1.bf16.msra.mxu1 %v4121_v15  ;;  %1897 = vmatprep.subr.bf16.mxu0 %v4122_v16  ;;  %v4163_v43 = vld [vmem:[#allocation5 + $0x1e8] ss:$24 sps:$4 sm:$0xff]   ;;  %v4166_v45 = vld [vmem:[#allocation5 + $0x21c] ss:$24 sps:$4 sm:$0xff]   ;;  %v4169_v49 = vld [vmem:[#allocation5 + $0x218] ss:$24 sps:$4 sm:$0xff]  }
  0x7e   :  { %2020 = vmatprep.subr.bf16.mxu1 %v4124_v17  ;;  %v105_v46 = vld [vmem:[#allocation3] sm:$0xff]  ;;  %v4170_v50 = vld [vmem:[#allocation5 + $0x244] ss:$24 sps:$4 sm:$0xff]   ;;  %v4174_v52 = vld [vmem:[#allocation5 + $0x240] ss:$24 sps:$4 sm:$0xff]   ;;  %vm3532_vm0 = vcmask 7168  }
  0x7f   :  { %v4168_v47 = vld [vmem:[#allocation5 + $0x210] ss:$24 sps:$4 sm:$0xff]   ;;  %v5008_v48 = vcombine.high %v105_v46, %v105_v46  ;;  %v4172_v51 = vld [vmem:[#allocation5 + $0x24c] ss:$24 sps:$4 sm:$0xff]   ;;  %v4178_v55 = vld [vmem:[#allocation5 + $0x27c] ss:$24 sps:$4 sm:$0xff]   ;;  %v5012_v5 = vcombine.low %v105_v46, %v105_v46 }
  0x80   :  { %1898 = vmatpush1.bf16.msra.mxu0 %v4126_v18  ;;  %v4175_v53 = vld [vmem:[#allocation5 + $0x248] ss:$24 sps:$4 sm:$0xff]   ;;  %v4176_v54 = vld [vmem:[#allocation5 + $0x274] ss:$24 sps:$4 sm:$0xff]   ;;  %v4181_v57 = vld [vmem:[#allocation5 + $0x278] ss:$24 sps:$4 sm:$0xff]  }
  0x81   :  { %2021 = vmatpush1.bf16.msra.mxu1 %v4127_v19  ;;  %1899 = vmatprep.subr.bf16.mxu0 %v4128_v20  ;;  %v4180_v56 = vld [vmem:[#allocation5 + $0x270] ss:$24 sps:$4 sm:$0xff]   ;;  %v4182_v58 = vld [vmem:[#allocation5 + $0x2a4] ss:$24 sps:$4 sm:$0xff]   ;;  %v4186_v60 = vld [vmem:[#allocation5 + $0x2a0] ss:$24 sps:$4 sm:$0xff]  }
  0x82   :  { %2022 = vmatprep.subr.bf16.mxu1 %v4130_v21  ;;  %1921 = vmatprep.mubr.bf16.mxu0 %v5008_v48  ;;  %v4184_v59 = vld [vmem:[#allocation5 + $0x2ac] ss:$24 sps:$4 sm:$0xff]   ;;  %v4187_v61 = vld [vmem:[#allocation5 + $0x2a8] ss:$24 sps:$4 sm:$0xff]   ;;  %v4190_v63 = vld [vmem:[#allocation5 + $0x2dc] ss:$24 sps:$4 sm:$0xff]  }
  0x83   :  { %2044 = vmatprep.mubr.bf16.mxu1 %v5008_v48  ;;  %v4188_v62 = vld [vmem:[#allocation5 + $0x2d4] ss:$24 sps:$4 sm:$0xff]   ;;  %v4192_v0 = vld [vmem:[#allocation5 + $0x2d0] ss:$24 sps:$4 sm:$0xff]   ;;  %v4197_v2 = vld [vmem:[#allocation5 + $0x304] ss:$24 sps:$4 sm:$0xff]  }
  0x84   :  { %1900 = vmatpush1.bf16.msra.mxu0 %v4132_v22  ;;  %v4193_v1 = vld [vmem:[#allocation5 + $0x2d8] ss:$24 sps:$4 sm:$0xff]   ;;  %v4200_v3 = vld [vmem:[#allocation5 + $0x30c] ss:$24 sps:$4 sm:$0xff]   ;;  %v4198_v6 = vld [vmem:[#allocation5 + $0x308] ss:$24 sps:$4 sm:$0xff]  }
  0x85   :  { %2023 = vmatpush1.bf16.msra.mxu1 %v4133_v23  ;;  %1901 = vmatprep.subr.bf16.mxu0 %v4134_v24  ;;  %v4195_v4 = vld [vmem:[#allocation5 + $0x300] ss:$24 sps:$4 sm:$0xff]   ;;  %v4204_v7 = vld [vmem:[#allocation5 + $0x334] ss:$24 sps:$4 sm:$0xff]   ;;  %v4202_v9 = vld [vmem:[#allocation5 + $0x330] ss:$24 sps:$4 sm:$0xff]  }
  0x86   :  { %2024 = vmatprep.subr.bf16.mxu1 %v4136_v25  ;;  %v4207_v8 = vld [vmem:[#allocation5 + $0x33c] ss:$24 sps:$4 sm:$0xff]   ;;  %v4205_v10 = vld [vmem:[#allocation5 + $0x338] ss:$24 sps:$4 sm:$0xff]   ;;  %v4213_v12 = vld [vmem:[#allocation5 + $0x36c] ss:$24 sps:$4 sm:$0xff]  }
  0x87   :  { %v4210_v11 = vld [vmem:[#allocation5 + $0x364] ss:$24 sps:$4 sm:$0xff]   ;;  %v4208_v13 = vld [vmem:[#allocation5 + $0x360] ss:$24 sps:$4 sm:$0xff]   ;;  %v4216_v15 = vld [vmem:[#allocation5 + $0x394] ss:$24 sps:$4 sm:$0xff]  }
  0x88   :  { %1902 = vmatpush1.bf16.msra.mxu0 %v4138_v26  ;;  %v4211_v14 = vld [vmem:[#allocation5 + $0x368] ss:$24 sps:$4 sm:$0xff]   ;;  %v4219_v16 = vld [vmem:[#allocation5 + $0x39c] ss:$24 sps:$4 sm:$0xff]   ;;  %v4217_v18 = vld [vmem:[#allocation5 + $0x398] ss:$24 sps:$4 sm:$0xff]  }
  0x89   :  { %2025 = vmatpush1.bf16.msra.mxu1 %v4139_v27  ;;  %1903 = vmatprep.subr.bf16.mxu0 %v4140_v28  ;;  %v4214_v17 = vld [vmem:[#allocation5 + $0x390] ss:$24 sps:$4 sm:$0xff]   ;;  %v4222_v19 = vld [vmem:[#allocation5 + $0x3c4] ss:$24 sps:$4 sm:$0xff]   ;;  %v4220_v21 = vld [vmem:[#allocation5 + $0x3c0] ss:$24 sps:$4 sm:$0xff]  }
  0x8a   :  { %2026 = vmatprep.subr.bf16.mxu1 %v4142_v29  ;;  %v4225_v20 = vld [vmem:[#allocation5 + $0x3cc] ss:$24 sps:$4 sm:$0xff]   ;;  %v4223_v22 = vld [vmem:[#allocation5 + $0x3c8] ss:$24 sps:$4 sm:$0xff]   ;;  %v4231_v24 = vld [vmem:[#allocation5 + $0x3fc] ss:$24 sps:$4 sm:$0xff]  }
  0x8b   :  { %v4228_v23 = vld [vmem:[#allocation5 + $0x3f4] ss:$24 sps:$4 sm:$0xff]   ;;  %v4226_v25 = vld [vmem:[#allocation5 + $0x3f0] ss:$24 sps:$4 sm:$0xff]   ;;  %v4234_v27 = vld [vmem:[#allocation5 + $0x424] ss:$24 sps:$4 sm:$0xff]  }
  0x8c   :  { %1904 = vmatpush1.bf16.msra.mxu0 %v4144_v30  ;;  %v4229_v26 = vld [vmem:[#allocation5 + $0x3f8] ss:$24 sps:$4 sm:$0xff]   ;;  %v4237_v28 = vld [vmem:[#allocation5 + $0x42c] ss:$24 sps:$4 sm:$0xff]  }
  0x8d   :  { %2027 = vmatpush1.bf16.msra.mxu1 %v4145_v31  ;;  %1905 = vmatprep.subr.bf16.mxu0 %v4146_v32  ;;  %v5016_v29 = vld [vmem:[#allocation3 + $0x8] sm:$0xff]  ;;  %v4232_v31 = vld [vmem:[#allocation5 + $0x420] ss:$24 sps:$4 sm:$0xff]   ;;  %v4261_v46 = vld [vmem:[#allocation5 + $0x4ec] ss:$24 sps:$4 sm:$0xff]  }
  0x8e   :  { %2028 = vmatprep.subr.bf16.mxu1 %v4148_v33  ;;  %v5020_v30 = vcombine.high %v5016_v29, %v5016_v29  ;;  %v4235_v32 = vld [vmem:[#allocation5 + $0x428] ss:$24 sps:$4 sm:$0xff]   ;;  %v4240_v33 = vld [vmem:[#allocation5 + $0x454] ss:$24 sps:$4 sm:$0xff]  }
  0x90   :  { %1906 = vmatpush1.bf16.msra.mxu0 %v4150_v34  ;;  %v4243_v34 = vld [vmem:[#allocation5 + $0x45c] ss:$24 sps:$4 sm:$0xff]  }
  0x91   :  { %2029 = vmatpush1.bf16.msra.mxu1 %v4151_v35  ;;  %1907 = vmatprep.subr.bf16.mxu0 %v4152_v36  ;;  %v4238_v35 = vld [vmem:[#allocation5 + $0x450] ss:$24 sps:$4 sm:$0xff]  }
  0x92   :  { %2030 = vmatprep.subr.bf16.mxu1 %v4154_v37  ;;  %v4241_v36 = vld [vmem:[#allocation5 + $0x458] ss:$24 sps:$4 sm:$0xff]   ;;  %v4246_v37 = vld [vmem:[#allocation5 + $0x484] ss:$24 sps:$4 sm:$0xff]  }
  0x94   :  { %1908 = vmatpush1.bf16.msra.mxu0 %v4156_v38  ;;  %v4249_v38 = vld [vmem:[#allocation5 + $0x48c] ss:$24 sps:$4 sm:$0xff]  }
  0x95   :  { %2031 = vmatpush1.bf16.msra.mxu1 %v4157_v39  ;;  %1909 = vmatprep.subr.bf16.mxu0 %v4158_v40  ;;  %v4244_v39 = vld [vmem:[#allocation5 + $0x480] ss:$24 sps:$4 sm:$0xff]  }
  0x96   :  { %2032 = vmatprep.subr.bf16.mxu1 %v4160_v41  ;;  %v4247_v40 = vld [vmem:[#allocation5 + $0x488] ss:$24 sps:$4 sm:$0xff]   ;;  %v4252_v41 = vld [vmem:[#allocation5 + $0x4b4] ss:$24 sps:$4 sm:$0xff]  }
  0x98   :  { %1910 = vmatpush1.bf16.msra.mxu0 %v4162_v42  ;;  %v4255_v42 = vld [vmem:[#allocation5 + $0x4bc] ss:$24 sps:$4 sm:$0xff]  }
  0x99   :  { %2033 = vmatpush1.bf16.msra.mxu1 %v4163_v43  ;;  %1911 = vmatprep.subr.bf16.mxu0 %v4164_v44  ;;  %v4250_v43 = vld [vmem:[#allocation5 + $0x4b0] ss:$24 sps:$4 sm:$0xff]  }
  0x9a   :  { %2034 = vmatprep.subr.bf16.mxu1 %v4166_v45  ;;  %v4253_v44 = vld [vmem:[#allocation5 + $0x4b8] ss:$24 sps:$4 sm:$0xff]   ;;  %v4258_v45 = vld [vmem:[#allocation5 + $0x4e4] ss:$24 sps:$4 sm:$0xff]  }
  0x9c   :  { %1912 = vmatpush1.bf16.msra.mxu0 %v4168_v47  ;;  %v4256_v47 = vld [vmem:[#allocation5 + $0x4e0] ss:$24 sps:$4 sm:$0xff]  }
  0x9d   :  { %2035 = vmatpush1.bf16.msra.mxu1 %v4169_v49  ;;  %1913 = vmatprep.subr.bf16.mxu0 %v4170_v50  ;;  %v4259_v49 = vld [vmem:[#allocation5 + $0x4e8] ss:$24 sps:$4 sm:$0xff]   ;;  %v4264_v50 = vld [vmem:[#allocation5 + $0x514] ss:$24 sps:$4 sm:$0xff]  }
  0x9e   :  { %2036 = vmatprep.subr.bf16.mxu1 %v4172_v51  ;;  %v4267_v51 = vld [vmem:[#allocation5 + $0x51c] ss:$24 sps:$4 sm:$0xff]  }
  0xa0   :  { %1914 = vmatpush1.bf16.msra.mxu0 %v4174_v52  ;;  %v4262_v52 = vld [vmem:[#allocation5 + $0x510] ss:$24 sps:$4 sm:$0xff]  }
  0xa1   :  { %2037 = vmatpush1.bf16.msra.mxu1 %v4175_v53  ;;  %1915 = vmatprep.subr.bf16.mxu0 %v4176_v54  ;;  %v4265_v53 = vld [vmem:[#allocation5 + $0x518] ss:$24 sps:$4 sm:$0xff]   ;;  %v4270_v54 = vld [vmem:[#allocation5 + $0x544] ss:$24 sps:$4 sm:$0xff]  }
  0xa2   :  { %2038 = vmatprep.subr.bf16.mxu1 %v4178_v55  ;;  %v4273_v55 = vld [vmem:[#allocation5 + $0x54c] ss:$24 sps:$4 sm:$0xff]  }
  0xa4   :  { %1916 = vmatpush1.bf16.msra.mxu0 %v4180_v56  ;;  %v4268_v56 = vld [vmem:[#allocation5 + $0x540] ss:$24 sps:$4 sm:$0xff]  }
  0xa5   :  { %2039 = vmatpush1.bf16.msra.mxu1 %v4181_v57  ;;  %1917 = vmatprep.subr.bf16.mxu0 %v4182_v58  ;;  %v4271_v57 = vld [vmem:[#allocation5 + $0x548] ss:$24 sps:$4 sm:$0xff]   ;;  %v4276_v58 = vld [vmem:[#allocation5 + $0x574] ss:$24 sps:$4 sm:$0xff]  }
  0xa6   :  { %2040 = vmatprep.subr.bf16.mxu1 %v4184_v59  ;;  %v4279_v59 = vld [vmem:[#allocation5 + $0x57c] ss:$24 sps:$4 sm:$0xff]  }
  0xa8   :  { %1918 = vmatpush1.bf16.msra.mxu0 %v4186_v60  ;;  %v4274_v60 = vld [vmem:[#allocation5 + $0x570] ss:$24 sps:$4 sm:$0xff]  }
  0xa9   :  { %2041 = vmatpush1.bf16.msra.mxu1 %v4187_v61  ;;  %1919 = vmatprep.subr.bf16.mxu0 %v4188_v62  ;;  %v4277_v61 = vld [vmem:[#allocation5 + $0x578] ss:$24 sps:$4 sm:$0xff]   ;;  %v4282_v62 = vld [vmem:[#allocation5 + $0x5a4] ss:$24 sps:$4 sm:$0xff]  }
  0xaa   :  { %2042 = vmatprep.subr.bf16.mxu1 %v4190_v63  ;;  %v4285_v63 = vld [vmem:[#allocation5 + $0x5ac] ss:$24 sps:$4 sm:$0xff]  }
  0xac   :  { %1920 = vmatpush1.bf16.msra.mxu0 %v4192_v0  ;;  %v4280_v0 = vld [vmem:[#allocation5 + $0x5a0] ss:$24 sps:$4 sm:$0xff]  }
  0xad   :  { %2043 = vmatpush1.bf16.msra.mxu1 %v4193_v1  ;;  %1930 = vmatprep.subr.bf16.mxu0 %v4197_v2  ;;  %v4283_v1 = vld [vmem:[#allocation5 + $0x5a8] ss:$24 sps:$4 sm:$0xff]   ;;  %v4288_v2 = vld [vmem:[#allocation5 + $0x5d4] ss:$24 sps:$4 sm:$0xff]  }
  0xae   :  { %2053 = vmatprep.subr.bf16.mxu1 %v4200_v3  ;;  %v4291_v3 = vld [vmem:[#allocation5 + $0x5dc] ss:$24 sps:$4 sm:$0xff]  }
  0xaf   :  { %1922 = vmatmul.mubr.bf16.vlgmr.msra.gmra.mrb[0].mxu0 %v5012_v5 }
  0xb0   :  { %2045 = vmatmul.mubr.bf16.vlgmr.msra.gmra.mrb[0].mxu1 %v5012_v5  ;;  %1931 = vmatpush1.bf16.msra.mxu0 %v4195_v4  ;;  %v4286_v4 = vld [vmem:[#allocation5 + $0x5d0] ss:$24 sps:$4 sm:$0xff]  }
  0xb1   :  { %2054 = vmatpush1.bf16.msra.mxu1 %v4198_v6  ;;  %1932 = vmatprep.subr.bf16.mxu0 %v4204_v7  ;;  %v4289_v6 = vld [vmem:[#allocation5 + $0x5d8] ss:$24 sps:$4 sm:$0xff]   ;;  %v4296_v7 = vld [vmem:[#allocation5 + $0x604] ss:$24 sps:$4 sm:$0xff]  }
  0xb2   :  { %2055 = vmatprep.subr.bf16.mxu1 %v4207_v8  ;;  %1962 = vmatprep.mubr.bf16.mxu0 %v5020_v30  ;;  %v4299_v8 = vld [vmem:[#allocation5 + $0x60c] ss:$24 sps:$4 sm:$0xff]  }
  0xb3   :  { %2085 = vmatprep.mubr.bf16.mxu1 %v5020_v30 }
  0xb4   :  { %1933 = vmatpush1.bf16.msra.mxu0 %v4202_v9  ;;  %v5026_v9 = vcombine.low %v5016_v29, %v5016_v29  ;;  %v4321_v29 = vld [vmem:[#allocation5 + $0x6c8] ss:$24 sps:$4 sm:$0xff]  }
  0xb5   :  { %2056 = vmatpush1.bf16.msra.mxu1 %v4205_v10  ;;  %1934 = vmatprep.subr.bf16.mxu0 %v4210_v11  ;;  %v4294_v10 = vld [vmem:[#allocation5 + $0x600] ss:$24 sps:$4 sm:$0xff]  }
  0xb6   :  { %2057 = vmatprep.subr.bf16.mxu1 %v4213_v12  ;;  %v4297_v11 = vld [vmem:[#allocation5 + $0x608] ss:$24 sps:$4 sm:$0xff]   ;;  %v4302_v12 = vld [vmem:[#allocation5 + $0x634] ss:$24 sps:$4 sm:$0xff]  }
  0xb8   :  { %1935 = vmatpush1.bf16.msra.mxu0 %v4208_v13  ;;  %v5028_v13 = vld [vmem:[#allocation3 + $0x10] sm:$0xff] }
  0xb9   :  { %2058 = vmatpush1.bf16.msra.mxu1 %v4211_v14  ;;  %1936 = vmatprep.subr.bf16.mxu0 %v4216_v15  ;;  %v4305_v14 = vld [vmem:[#allocation5 + $0x63c] ss:$24 sps:$4 sm:$0xff]   ;;  %v5032_v15 = vcombine.high %v5028_v13, %v5028_v13 }
  0xba   :  { %2059 = vmatprep.subr.bf16.mxu1 %v4219_v16  ;;  %v4300_v16 = vld [vmem:[#allocation5 + $0x630] ss:$24 sps:$4 sm:$0xff]  }
  0xbc   :  { %1937 = vmatpush1.bf16.msra.mxu0 %v4214_v17  ;;  %v4303_v17 = vld [vmem:[#allocation5 + $0x638] ss:$24 sps:$4 sm:$0xff]  }
  0xbd   :  { %2060 = vmatpush1.bf16.msra.mxu1 %v4217_v18  ;;  %1938 = vmatprep.subr.bf16.mxu0 %v4222_v19  ;;  %v4308_v18 = vld [vmem:[#allocation5 + $0x664] ss:$24 sps:$4 sm:$0xff]  }
  0xbe   :  { %2061 = vmatprep.subr.bf16.mxu1 %v4225_v20  ;;  %v4311_v19 = vld [vmem:[#allocation5 + $0x66c] ss:$24 sps:$4 sm:$0xff]   ;;  %v4306_v20 = vld [vmem:[#allocation5 + $0x660] ss:$24 sps:$4 sm:$0xff]  }
  0xc0   :  { %1939 = vmatpush1.bf16.msra.mxu0 %v4220_v21  ;;  %v4309_v21 = vld [vmem:[#allocation5 + $0x668] ss:$24 sps:$4 sm:$0xff]  }
  0xc1   :  { %2062 = vmatpush1.bf16.msra.mxu1 %v4223_v22  ;;  %1940 = vmatprep.subr.bf16.mxu0 %v4228_v23  ;;  %v4314_v22 = vld [vmem:[#allocation5 + $0x694] ss:$24 sps:$4 sm:$0xff]  }
  0xc2   :  { %2063 = vmatprep.subr.bf16.mxu1 %v4231_v24  ;;  %v4317_v23 = vld [vmem:[#allocation5 + $0x69c] ss:$24 sps:$4 sm:$0xff]   ;;  %v4312_v24 = vld [vmem:[#allocation5 + $0x690] ss:$24 sps:$4 sm:$0xff]  }
  0xc4   :  { %1941 = vmatpush1.bf16.msra.mxu0 %v4226_v25  ;;  %v4315_v25 = vld [vmem:[#allocation5 + $0x698] ss:$24 sps:$4 sm:$0xff]  }
  0xc5   :  { %2064 = vmatpush1.bf16.msra.mxu1 %v4229_v26  ;;  %1942 = vmatprep.subr.bf16.mxu0 %v4234_v27  ;;  %v4320_v26 = vld [vmem:[#allocation5 + $0x6c4] ss:$24 sps:$4 sm:$0xff]  }
  0xc6   :  { %2065 = vmatprep.subr.bf16.mxu1 %v4237_v28  ;;  %v4323_v27 = vld [vmem:[#allocation5 + $0x6cc] ss:$24 sps:$4 sm:$0xff]   ;;  %v4318_v28 = vld [vmem:[#allocation5 + $0x6c0] ss:$24 sps:$4 sm:$0xff]  }
  0xc8   :  { %1943 = vmatpush1.bf16.msra.mxu0 %v4232_v31  ;;  %v4326_v31 = vld [vmem:[#allocation5 + $0x6f4] ss:$24 sps:$4 sm:$0xff]  }
  0xc9   :  { %2066 = vmatpush1.bf16.msra.mxu1 %v4235_v32  ;;  %1944 = vmatprep.subr.bf16.mxu0 %v4240_v33  ;;  %v4329_v32 = vld [vmem:[#allocation5 + $0x6fc] ss:$24 sps:$4 sm:$0xff]   ;;  %v4324_v33 = vld [vmem:[#allocation5 + $0x6f0] ss:$24 sps:$4 sm:$0xff]  }
  0xca   :  { %2067 = vmatprep.subr.bf16.mxu1 %v4243_v34  ;;  %v4327_v34 = vld [vmem:[#allocation5 + $0x6f8] ss:$24 sps:$4 sm:$0xff]  }
  0xcc   :  { %1945 = vmatpush1.bf16.msra.mxu0 %v4238_v35  ;;  %v4332_v35 = vld [vmem:[#allocation5 + $0x724] ss:$24 sps:$4 sm:$0xff]  }
  0xcd   :  { %2068 = vmatpush1.bf16.msra.mxu1 %v4241_v36  ;;  %1946 = vmatprep.subr.bf16.mxu0 %v4246_v37  ;;  %v4335_v36 = vld [vmem:[#allocation5 + $0x72c] ss:$24 sps:$4 sm:$0xff]   ;;  %v4330_v37 = vld [vmem:[#allocation5 + $0x720] ss:$24 sps:$4 sm:$0xff]  }
  0xce   :  { %2069 = vmatprep.subr.bf16.mxu1 %v4249_v38  ;;  %v4333_v38 = vld [vmem:[#allocation5 + $0x728] ss:$24 sps:$4 sm:$0xff]  }
  0xd0   :  { %1947 = vmatpush1.bf16.msra.mxu0 %v4244_v39  ;;  %v4338_v39 = vld [vmem:[#allocation5 + $0x754] ss:$24 sps:$4 sm:$0xff]  }
  0xd1   :  { %2070 = vmatpush1.bf16.msra.mxu1 %v4247_v40  ;;  %1948 = vmatprep.subr.bf16.mxu0 %v4252_v41  ;;  %v4341_v40 = vld [vmem:[#allocation5 + $0x75c] ss:$24 sps:$4 sm:$0xff]   ;;  %v4336_v41 = vld [vmem:[#allocation5 + $0x750] ss:$24 sps:$4 sm:$0xff]  }
  0xd2   :  { %2071 = vmatprep.subr.bf16.mxu1 %v4255_v42  ;;  %v4339_v42 = vld [vmem:[#allocation5 + $0x758] ss:$24 sps:$4 sm:$0xff]  }
  0xd4   :  { %1949 = vmatpush1.bf16.msra.mxu0 %v4250_v43  ;;  %v4344_v43 = vld [vmem:[#allocation5 + $0x784] ss:$24 sps:$4 sm:$0xff]  }
  0xd5   :  { %2072 = vmatpush1.bf16.msra.mxu1 %v4253_v44  ;;  %1950 = vmatprep.subr.bf16.mxu0 %v4258_v45  ;;  %v4347_v44 = vld [vmem:[#allocation5 + $0x78c] ss:$24 sps:$4 sm:$0xff]   ;;  %v4342_v45 = vld [vmem:[#allocation5 + $0x780] ss:$24 sps:$4 sm:$0xff]  }
  0xd6   :  { %2073 = vmatprep.subr.bf16.mxu1 %v4261_v46  ;;  %v4345_v46 = vld [vmem:[#allocation5 + $0x788] ss:$24 sps:$4 sm:$0xff]  }
  0xd8   :  { %1951 = vmatpush1.bf16.msra.mxu0 %v4256_v47  ;;  %v4350_v47 = vld [vmem:[#allocation5 + $0x7b4] ss:$24 sps:$4 sm:$0xff]  }
  0xd9   :  { %2074 = vmatpush1.bf16.msra.mxu1 %v4259_v49  ;;  %1952 = vmatprep.subr.bf16.mxu0 %v4264_v50  ;;  %v4353_v49 = vld [vmem:[#allocation5 + $0x7bc] ss:$24 sps:$4 sm:$0xff]   ;;  %v4348_v50 = vld [vmem:[#allocation5 + $0x7b0] ss:$24 sps:$4 sm:$0xff]  }
  0xda   :  { %2075 = vmatprep.subr.bf16.mxu1 %v4267_v51  ;;  %v4351_v51 = vld [vmem:[#allocation5 + $0x7b8] ss:$24 sps:$4 sm:$0xff]  }
  0xdc   :  { %1953 = vmatpush1.bf16.msra.mxu0 %v4262_v52  ;;  %v4890_v52 = vmov 0  }
  0xdd   :  { %2076 = vmatpush1.bf16.msra.mxu1 %v4265_v53  ;;  %1954 = vmatprep.subr.bf16.mxu0 %v4270_v54  ;;  %v2264_v53 = vld [vmem:[%s5115_s6] sm:$0xff]  ;;  %v4356_v54 = vld [vmem:[#allocation5 + $0x7e4] ss:$24 sps:$4 sm:$0xff]  }
  0xde   :  { %2077 = vmatprep.subr.bf16.mxu1 %v4273_v55  ;;  %4097 = vset.pattern.permute.xlu0 %v4890_v52  ;;  %v4359_v55 = vld [vmem:[#allocation5 + $0x7ec] ss:$24 sps:$4 sm:$0xff]   ;;  %v4538_v52 = vld [vmem:[#allocation8 + $0x4c] ss:$12 sps:$4 sm:$0xff]  }
  0xdf   :  { %2267 = vperm.xlu0 %4097, %v2264_v53   ;;  %v4431_v53 = vld [vmem:[#allocation5 + $0x280] ss:$24 sps:$4 sm:$0xff]  }
  0xe0   :  { %1955 = vmatpush1.bf16.msra.mxu0 %v4268_v56  ;;  %v4354_v56 = vld [vmem:[#allocation5 + $0x7e0] ss:$24 sps:$4 sm:$0xff]  }
  0xe1   :  { %2078 = vmatpush1.bf16.msra.mxu1 %v4271_v57  ;;  %1956 = vmatprep.subr.bf16.mxu0 %v4276_v58  ;;  %v4357_v57 = vld [vmem:[#allocation5 + $0x7e8] ss:$24 sps:$4 sm:$0xff]   ;;  %v4362_v58 = vld [vmem:[#allocation5 + $0x814] ss:$24 sps:$4 sm:$0xff]  }
  0xe2   :  { %2079 = vmatprep.subr.bf16.mxu1 %v4279_v59  ;;  %v4365_v59 = vld [vmem:[#allocation5 + $0x81c] ss:$24 sps:$4 sm:$0xff]  }
  0xe4   :  { %1957 = vmatpush1.bf16.msra.mxu0 %v4274_v60  ;;  %v4360_v60 = vld [vmem:[#allocation5 + $0x810] ss:$24 sps:$4 sm:$0xff]  }
  0xe5   :  { %2080 = vmatpush1.bf16.msra.mxu1 %v4277_v61  ;;  %1958 = vmatprep.subr.bf16.mxu0 %v4282_v62  ;;  %v4363_v61 = vld [vmem:[#allocation5 + $0x818] ss:$24 sps:$4 sm:$0xff]   ;;  %v4368_v62 = vld [vmem:[#allocation5 + $0x844] ss:$24 sps:$4 sm:$0xff]  }
  0xe6   :  { %2081 = vmatprep.subr.bf16.mxu1 %v4285_v63  ;;  %v4371_v63 = vld [vmem:[#allocation5 + $0x84c] ss:$24 sps:$4 sm:$0xff]  }
  0xe8   :  { %1959 = vmatpush1.bf16.msra.mxu0 %v4280_v0  ;;  %v4366_v0 = vld [vmem:[#allocation5 + $0x840] ss:$24 sps:$4 sm:$0xff]  }
  0xe9   :  { %2082 = vmatpush1.bf16.msra.mxu1 %v4283_v1  ;;  %1960 = vmatprep.subr.bf16.mxu0 %v4288_v2  ;;  %v4369_v1 = vld [vmem:[#allocation5 + $0x848] ss:$24 sps:$4 sm:$0xff]   ;;  %v4374_v2 = vld [vmem:[#allocation5 + $0x874] ss:$24 sps:$4 sm:$0xff]  }
  0xea   :  { %2083 = vmatprep.subr.bf16.mxu1 %v4291_v3  ;;  %v4377_v3 = vld [vmem:[#allocation5 + $0x87c] ss:$24 sps:$4 sm:$0xff]  }
  0xec   :  { %1961 = vmatpush1.bf16.msra.mxu0 %v4286_v4  ;;  %v4372_v4 = vld [vmem:[#allocation5 + $0x870] ss:$24 sps:$4 sm:$0xff]  }
  0xed   :  { %2084 = vmatpush1.bf16.msra.mxu1 %v4289_v6  ;;  %1971 = vmatprep.subr.bf16.mxu0 %v4296_v7  ;;  %v4375_v6 = vld [vmem:[#allocation5 + $0x878] ss:$24 sps:$4 sm:$0xff]   ;;  %v4380_v7 = vld [vmem:[#allocation5 + $0x8a4] ss:$24 sps:$4 sm:$0xff]  }
  0xee   :  { %2094 = vmatprep.subr.bf16.mxu1 %v4299_v8  ;;  %v4383_v8 = vld [vmem:[#allocation5 + $0x8ac] ss:$24 sps:$4 sm:$0xff]  }
  0xef   :  { %1963 = vmatmul.mubr.bf16.vlgmr.msra.gmra.mrb[0].mxu0 %v5026_v9 }
  0xf0   :  { %2086 = vmatmul.mubr.bf16.vlgmr.msra.gmra.mrb[0].mxu1 %v5026_v9  ;;  %1972 = vmatpush1.bf16.msra.mxu0 %v4294_v10  ;;  %v4378_v10 = vld [vmem:[#allocation5 + $0x8a0] ss:$24 sps:$4 sm:$0xff]  }
  0xf1   :  { %2095 = vmatpush1.bf16.msra.mxu1 %v4297_v11  ;;  %1973 = vmatprep.subr.bf16.mxu0 %v4302_v12  ;;  %v4381_v11 = vld [vmem:[#allocation5 + $0x8a8] ss:$24 sps:$4 sm:$0xff]   ;;  %v4386_v12 = vld [vmem:[#allocation5 + $0x8d4] ss:$24 sps:$4 sm:$0xff]  }
  0xf2   :  { %2096 = vmatprep.subr.bf16.mxu1 %v4305_v14  ;;  %2003 = vmatprep.mubr.bf16.mxu0 %v5032_v15  ;;  %v4389_v14 = vld [vmem:[#allocation5 + $0x8dc] ss:$24 sps:$4 sm:$0xff]  }
  0xf3   :  { %2126 = vmatprep.mubr.bf16.mxu1 %v5032_v15 }
  0xf4   :  { %1974 = vmatpush1.bf16.msra.mxu0 %v4300_v16  ;;  %v4384_v16 = vld [vmem:[#allocation5 + $0x8d0] ss:$24 sps:$4 sm:$0xff]  }
  0xf5   :  { %2097 = vmatpush1.bf16.msra.mxu1 %v4303_v17  ;;  %1975 = vmatprep.subr.bf16.mxu0 %v4308_v18  ;;  %v4387_v17 = vld [vmem:[#allocation5 + $0x8d8] ss:$24 sps:$4 sm:$0xff]   ;;  %v4394_v18 = vld [vmem:[#allocation5 + $0x14] ss:$24 sps:$4 sm:$0xff]  }
  0xf6   :  { %2098 = vmatprep.subr.bf16.mxu1 %v4311_v19  ;;  %v5043_v19 = vcombine.low %v5028_v13, %v5028_v13  ;;  %v4401_v13 = vld [vmem:[#allocation5 + $0xa0] ss:$24 sps:$4 sm:$0xff]  }
  0xf8   :  { %1976 = vmatpush1.bf16.msra.mxu0 %v4306_v20  ;;  %v4392_v20 = vld [vmem:[#allocation5 + $0x10] ss:$24 sps:$4 sm:$0xff]  }
  0xf9   :  { %2099 = vmatpush1.bf16.msra.mxu1 %v4309_v21  ;;  %1977 = vmatprep.subr.bf16.mxu0 %v4314_v22  ;;  %v4397_v21 = vld [vmem:[#allocation5 + $0x44] ss:$24 sps:$4 sm:$0xff]   ;;  %v4395_v22 = vld [vmem:[#allocation5 + $0x40] ss:$24 sps:$4 sm:$0xff]  }
  0xfa   :  { %2100 = vmatprep.subr.bf16.mxu1 %v4317_v23  ;;  %v4400_v23 = vld [vmem:[#allocation5 + $0x74] ss:$24 sps:$4 sm:$0xff]  }
  0xfc   :  { %1978 = vmatpush1.bf16.msra.mxu0 %v4312_v24  ;;  %v4398_v24 = vld [vmem:[#allocation5 + $0x70] ss:$24 sps:$4 sm:$0xff]  }
  0xfd   :  { %2101 = vmatpush1.bf16.msra.mxu1 %v4315_v25  ;;  %1979 = vmatprep.subr.bf16.mxu0 %v4320_v26  ;;  %v4403_v25 = vld [vmem:[#allocation5 + $0xa4] ss:$24 sps:$4 sm:$0xff]   ;;  %v4406_v26 = vld [vmem:[#allocation5 + $0xd4] ss:$24 sps:$4 sm:$0xff]  }
  0xfe   :  { %2102 = vmatprep.subr.bf16.mxu1 %v4323_v27  ;;  %v4404_v27 = vld [vmem:[#allocation5 + $0xd0] ss:$24 sps:$4 sm:$0xff]  }
 0x100   :  { %1980 = vmatpush1.bf16.msra.mxu0 %v4318_v28  ;;  %v4409_v28 = vld [vmem:[#allocation5 + $0x104] ss:$24 sps:$4 sm:$0xff]  }
 0x101   :  { %2103 = vmatpush1.bf16.msra.mxu1 %v4321_v29  ;;  %1981 = vmatprep.subr.bf16.mxu0 %v4326_v31  ;;  %v4407_v29 = vld [vmem:[#allocation5 + $0x100] ss:$24 sps:$4 sm:$0xff]   ;;  %v4412_v31 = vld [vmem:[#allocation5 + $0x134] ss:$24 sps:$4 sm:$0xff]  }
 0x102   :  { %2104 = vmatprep.subr.bf16.mxu1 %v4329_v32  ;;  %v4410_v32 = vld [vmem:[#allocation5 + $0x130] ss:$24 sps:$4 sm:$0xff]  }
 0x104   :  { %1982 = vmatpush1.bf16.msra.mxu0 %v4324_v33  ;;  %v4413_v33 = vld [vmem:[#allocation5 + $0x160] ss:$24 sps:$4 sm:$0xff]  }
 0x105   :  { %2105 = vmatpush1.bf16.msra.mxu1 %v4327_v34  ;;  %1983 = vmatprep.subr.bf16.mxu0 %v4332_v35  ;;  %v4418_v34 = vld [vmem:[#allocation5 + $0x194] ss:$24 sps:$4 sm:$0xff]   ;;  %v4416_v35 = vld [vmem:[#allocation5 + $0x190] ss:$24 sps:$4 sm:$0xff]  }
 0x106   :  { %2106 = vmatprep.subr.bf16.mxu1 %v4335_v36  ;;  %v4421_v36 = vld [vmem:[#allocation5 + $0x1c4] ss:$24 sps:$4 sm:$0xff]  }
 0x108   :  { %1984 = vmatpush1.bf16.msra.mxu0 %v4330_v37  ;;  %v4419_v37 = vld [vmem:[#allocation5 + $0x1c0] ss:$24 sps:$4 sm:$0xff]  }
 0x109   :  { %2107 = vmatpush1.bf16.msra.mxu1 %v4333_v38  ;;  %1985 = vmatprep.subr.bf16.mxu0 %v4338_v39  ;;  %v4424_v38 = vld [vmem:[#allocation5 + $0x1f4] ss:$24 sps:$4 sm:$0xff]  }
 0x10a   :  { %2108 = vmatprep.subr.bf16.mxu1 %v4341_v40  ;;  %v4520_v39 = vld [vmem:[#allocation8 + $0x4] ss:$12 sps:$4 sm:$0xff]  }
 0x10b   :  { %v4422_v40 = vld [vmem:[#allocation5 + $0x1f0] ss:$24 sps:$4 sm:$0xff]  }
 0x10c   :  { %1986 = vmatpush1.bf16.msra.mxu0 %v4336_v41  ;;  %v4427_v41 = vld [vmem:[#allocation5 + $0x224] ss:$24 sps:$4 sm:$0xff]  }
 0x10d   :  { %2109 = vmatpush1.bf16.msra.mxu1 %v4339_v42  ;;  %1987 = vmatprep.subr.bf16.mxu0 %v4344_v43  ;;  %v4518_v42 = vld [vmem:[#allocation8] ss:$12 sps:$4 sm:$0xff]   ;;  %v4526_v43 = vld [vmem:[#allocation8 + $0x1c] ss:$12 sps:$4 sm:$0xff]  }
 0x10e   :  { %2110 = vmatprep.subr.bf16.mxu1 %v4347_v44  ;;  %v4425_v44 = vld [vmem:[#allocation5 + $0x220] ss:$24 sps:$4 sm:$0xff]  }
 0x110   :  { %1988 = vmatpush1.bf16.msra.mxu0 %v4342_v45  ;;  %v4430_v45 = vld [vmem:[#allocation5 + $0x254] ss:$24 sps:$4 sm:$0xff]  }
 0x111   :  { %2111 = vmatpush1.bf16.msra.mxu1 %v4345_v46  ;;  %1989 = vmatprep.subr.bf16.mxu0 %v4350_v47  ;;  %v4524_v46 = vld [vmem:[#allocation8 + $0x18] ss:$12 sps:$4 sm:$0xff]   ;;  %v4532_v47 = vld [vmem:[#allocation8 + $0x34] ss:$12 sps:$4 sm:$0xff]  }
 0x112   :  { %2112 = vmatprep.subr.bf16.mxu1 %v4353_v49  ;;  %v4428_v49 = vld [vmem:[#allocation5 + $0x250] ss:$24 sps:$4 sm:$0xff]  }
 0x114   :  { %1990 = vmatpush1.bf16.msra.mxu0 %v4348_v50  ;;  %v4433_v50 = vld [vmem:[#allocation5 + $0x284] ss:$24 sps:$4 sm:$0xff]  }
 0x115   :  { %2113 = vmatpush1.bf16.msra.mxu1 %v4351_v51  ;;  %1991 = vmatprep.subr.bf16.mxu0 %v4356_v54  ;;  %v4530_v51 = vld [vmem:[#allocation8 + $0x30] ss:$12 sps:$4 sm:$0xff]  }
 0x116   :  { %2114 = vmatprep.subr.bf16.mxu1 %v4359_v55  ;;  %v4436_v54 = vld [vmem:[#allocation5 + $0x2b4] ss:$24 sps:$4 sm:$0xff]  }
 0x117   :  { %v4536_v55 = vld [vmem:[#allocation8 + $0x48] ss:$12 sps:$4 sm:$0xff]  }
 0x118   :  { %1992 = vmatpush1.bf16.msra.mxu0 %v4354_v56  ;;  %v4544_v56 = vld [vmem:[#allocation8 + $0x64] ss:$12 sps:$4 sm:$0xff]  }
 0x119   :  { %2115 = vmatpush1.bf16.msra.mxu1 %v4357_v57  ;;  %1993 = vmatprep.subr.bf16.mxu0 %v4362_v58  ;;  %v4434_v57 = vld [vmem:[#allocation5 + $0x2b0] ss:$24 sps:$4 sm:$0xff]   ;;  %v4439_v58 = vld [vmem:[#allocation5 + $0x2e4] ss:$24 sps:$4 sm:$0xff]  }
 0x11a   :  { %2116 = vmatprep.subr.bf16.mxu1 %v4365_v59  ;;  %v4542_v59 = vld [vmem:[#allocation8 + $0x60] ss:$12 sps:$4 sm:$0xff]  }
 0x11c   :  { %1994 = vmatpush1.bf16.msra.mxu0 %v4360_v60  ;;  %v4550_v60 = vld [vmem:[#allocation8 + $0x7c] ss:$12 sps:$4 sm:$0xff]  }
 0x11d   :  { %2117 = vmatpush1.bf16.msra.mxu1 %v4363_v61  ;;  %1995 = vmatprep.subr.bf16.mxu0 %v4368_v62  ;;  %v4437_v61 = vld [vmem:[#allocation5 + $0x2e0] ss:$24 sps:$4 sm:$0xff]   ;;  %v4442_v62 = vld [vmem:[#allocation5 + $0x314] ss:$24 sps:$4 sm:$0xff]  }
 0x11e   :  { %2118 = vmatprep.subr.bf16.mxu1 %v4371_v63  ;;  %v4548_v63 = vld [vmem:[#allocation8 + $0x78] ss:$12 sps:$4 sm:$0xff]  }
 0x120   :  { %1996 = vmatpush1.bf16.msra.mxu0 %v4366_v0  ;;  %v4440_v0 = vld [vmem:[#allocation5 + $0x310] ss:$24 sps:$4 sm:$0xff]  }
 0x121   :  { %2119 = vmatpush1.bf16.msra.mxu1 %v4369_v1  ;;  %1997 = vmatprep.subr.bf16.mxu0 %v4374_v2  ;;  %v4445_v1 = vld [vmem:[#allocation5 + $0x344] ss:$24 sps:$4 sm:$0xff]  }
 0x122   :  { %2120 = vmatprep.subr.bf16.mxu1 %v4377_v3  ;;  %v4556_v2 = vld [vmem:[#allocation8 + $0x94] ss:$12 sps:$4 sm:$0xff]   ;;  %v4554_v3 = vld [vmem:[#allocation8 + $0x90] ss:$12 sps:$4 sm:$0xff]  }
 0x124   :  { %1998 = vmatpush1.bf16.msra.mxu0 %v4372_v4  ;;  %v4557_v4 = vld [vmem:[#allocation8 + $0xa8] ss:$12 sps:$4 sm:$0xff]  }
 0x125   :  { %2121 = vmatpush1.bf16.msra.mxu1 %v4375_v6  ;;  %1999 = vmatprep.subr.bf16.mxu0 %v4380_v7  ;;  %v4559_v6 = vld [vmem:[#allocation8 + $0xac] ss:$12 sps:$4 sm:$0xff]  }
 0x126   :  { %2122 = vmatprep.subr.bf16.mxu1 %v4383_v8  ;;  %v4443_v7 = vld [vmem:[#allocation5 + $0x340] ss:$24 sps:$4 sm:$0xff]  }
 0x127   :  { %v4562_v8 = vld [vmem:[#allocation8 + $0xc4] ss:$12 sps:$4 sm:$0xff]  }
 0x128   :  { %2000 = vmatpush1.bf16.msra.mxu0 %v4378_v10  ;;  %v4448_v10 = vld [vmem:[#allocation5 + $0x374] ss:$24 sps:$4 sm:$0xff]  }
 0x129   :  { %2123 = vmatpush1.bf16.msra.mxu1 %v4381_v11  ;;  %2001 = vmatprep.subr.bf16.mxu0 %v4386_v12  ;;  %v4560_v11 = vld [vmem:[#allocation8 + $0xc0] ss:$12 sps:$4 sm:$0xff]   ;;  %v4567_v12 = vld [vmem:[#allocation8 + $0xdc] ss:$12 sps:$4 sm:$0xff]  }
 0x12a   :  { %2124 = vmatprep.subr.bf16.mxu1 %v4389_v14  ;;  %v4446_v14 = vld [vmem:[#allocation5 + $0x370] ss:$24 sps:$4 sm:$0xff]  }
 0x12c   :  { %2002 = vmatpush1.bf16.msra.mxu0 %v4384_v16  ;;  %v4451_v16 = vld [vmem:[#allocation5 + $0x3a4] ss:$24 sps:$4 sm:$0xff]  }
 0x12d   :  { %2125 = vmatpush1.bf16.msra.mxu1 %v4387_v17  ;;  %2135 = vmatprep.subr.bf16.mxu0 %v4394_v18  ;;  %v4572_v17 = vld [vmem:[#allocation8 + $0xf4] ss:$12 sps:$4 sm:$0xff]  }
 0x12e   :  { %3259 = vmatprep.subr.bf16.mxu1 %v4520_v39  ;;  %v4449_v18 = vld [vmem:[#allocation5 + $0x3a0] ss:$24 sps:$4 sm:$0xff]  }
 0x12f   :  { %2004 = vmatmul.mubr.bf16.vlgmr.msra.gmra.mrb[0].mxu0 %v5043_v19  ;;  %v4467_v39 = vld [vmem:[#allocation5 + $0x4c0] ss:$24 sps:$4 sm:$0xff]  }
 0x130   :  { %2127 = vmatmul.mubr.bf16.vlgmr.msra.gmra.mrb[0].mxu1 %v5043_v19  ;;  %2136 = vmatpush1.bf16.msra.mxu0 %v4392_v20  ;;  %v4570_v20 = vld [vmem:[#allocation8 + $0xf0] ss:$12 sps:$4 sm:$0xff]  }
 0x131   :  { %2167 = vmatprep.mubr.bf16.mxu0 %v5008_v48  ;;  %2137 = vmatprep.subr.bf16.mxu0 %v4397_v21  ;;  %v4415_v48 = vld [vmem:[#allocation5 + $0x164] ss:$24 sps:$4 sm:$0xff]  }
 0x132   :  { %3260 = vmatpush1.bf16.msra.mxu1 %v4518_v42  ;;  %v4577_v21 = vld [vmem:[#allocation8 + $0x10c] ss:$12 sps:$4 sm:$0xff]  }
 0x133   :  { %3261 = vmatprep.subr.bf16.mxu1 %v4526_v43  ;;  %v4470_v42 = vld [vmem:[#allocation5 + $0x4f0] ss:$24 sps:$4 sm:$0xff]   ;;  %v4475_v43 = vld [vmem:[#allocation5 + $0x524] ss:$24 sps:$4 sm:$0xff]  }
 0x134   :  { %2138 = vmatpush1.bf16.msra.mxu0 %v4395_v22  ;;  %v4452_v22 = vld [vmem:[#allocation5 + $0x3d0] ss:$24 sps:$4 sm:$0xff]  }
 0x135   :  { %2139 = vmatprep.subr.bf16.mxu0 %v4400_v23  ;;  %v4457_v23 = vld [vmem:[#allocation5 + $0x404] ss:$24 sps:$4 sm:$0xff]  }
 0x136   :  { %3262 = vmatpush1.bf16.msra.mxu1 %v4524_v46  ;;  %v4478_v46 = vld [vmem:[#allocation5 + $0x554] ss:$24 sps:$4 sm:$0xff]  }
 0x137   :  { %3263 = vmatprep.subr.bf16.mxu1 %v4532_v47  ;;  %v4476_v47 = vld [vmem:[#allocation5 + $0x550] ss:$24 sps:$4 sm:$0xff]  }
 0x138   :  { %2140 = vmatpush1.bf16.msra.mxu0 %v4398_v24  ;;  %v4575_v24 = vld [vmem:[#allocation8 + $0x108] ss:$12 sps:$4 sm:$0xff]  }
 0x139   :  { %2141 = vmatprep.subr.bf16.mxu0 %v4403_v25  ;;  %v4455_v25 = vld [vmem:[#allocation5 + $0x400] ss:$24 sps:$4 sm:$0xff]  }
 0x13a   :  { %3264 = vmatpush1.bf16.msra.mxu1 %v4530_v51  ;;  %v4484_v51 = vld [vmem:[#allocation5 + $0x5b4] ss:$24 sps:$4 sm:$0xff]  }
 0x13b   :  { %3265 = vmatprep.subr.bf16.mxu1 %v4538_v52  ;;  %v4482_v52 = vld [vmem:[#allocation5 + $0x5b0] ss:$24 sps:$4 sm:$0xff]  }
 0x13c   :  { %2142 = vmatpush1.bf16.msra.mxu0 %v4401_v13  ;;  %v4460_v13 = vld [vmem:[#allocation5 + $0x434] ss:$24 sps:$4 sm:$0xff]  }
 0x13d   :  { %2143 = vmatprep.subr.bf16.mxu0 %v4406_v26  ;;  %v4458_v26 = vld [vmem:[#allocation5 + $0x430] ss:$24 sps:$4 sm:$0xff]  }
 0x13e   :  { %3266 = vmatpush1.bf16.msra.mxu1 %v4536_v55  ;;  %v4490_v55 = vld [vmem:[#allocation5 + $0x614] ss:$24 sps:$4 sm:$0xff]  }
 0x13f   :  { %3267 = vmatprep.subr.bf16.mxu1 %v4544_v56  ;;  %v4488_v56 = vld [vmem:[#allocation5 + $0x610] ss:$24 sps:$4 sm:$0xff]  }
 0x140   :  { %2144 = vmatpush1.bf16.msra.mxu0 %v4404_v27  ;;  %v4463_v27 = vld [vmem:[#allocation5 + $0x464] ss:$24 sps:$4 sm:$0xff]  }
 0x141   :  { %2145 = vmatprep.subr.bf16.mxu0 %v4409_v28  ;;  %v4582_v28 = vld [vmem:[#allocation8 + $0x124] ss:$12 sps:$4 sm:$0xff]  }
 0x142   :  { %3268 = vmatpush1.bf16.msra.mxu1 %v4542_v59  ;;  %v4496_v59 = vld [vmem:[#allocation5 + $0x674] ss:$24 sps:$4 sm:$0xff]  }
 0x143   :  { %3269 = vmatprep.subr.bf16.mxu1 %v4550_v60  ;;  %v4494_v60 = vld [vmem:[#allocation5 + $0x670] ss:$24 sps:$4 sm:$0xff]  }
 0x144   :  { %2146 = vmatpush1.bf16.msra.mxu0 %v4407_v29  ;;  %v4580_v29 = vld [vmem:[#allocation8 + $0x120] ss:$12 sps:$4 sm:$0xff]  }
 0x145   :  { %2147 = vmatprep.subr.bf16.mxu0 %v4412_v31  ;;  %v4461_v31 = vld [vmem:[#allocation5 + $0x460] ss:$24 sps:$4 sm:$0xff]  }
 0x146   :  { %3270 = vmatpush1.bf16.msra.mxu1 %v4548_v63  ;;  %v4502_v63 = vld [vmem:[#allocation5 + $0x6d4] ss:$24 sps:$4 sm:$0xff]  }
 0x147   :  { %3271 = vmatprep.subr.bf16.mxu1 %v4556_v2  ;;  %v4508_v2 = vld [vmem:[#allocation5 + $0x734] ss:$24 sps:$4 sm:$0xff]  }
 0x148   :  { %2148 = vmatpush1.bf16.msra.mxu0 %v4410_v32  ;;  %v4585_v32 = vld [vmem:[#allocation8 + $0x138] ss:$12 sps:$4 sm:$0xff]  }
 0x149   :  { %2149 = vmatprep.subr.bf16.mxu0 %v4415_v48  ;;  %v4587_v48 = vld [vmem:[#allocation8 + $0x13c] ss:$12 sps:$4 sm:$0xff]  }
 0x14a   :  { %3272 = vmatpush1.bf16.msra.mxu1 %v4554_v3  ;;  %v4511_v3 = vld [vmem:[#allocation5 + $0x764] ss:$24 sps:$4 sm:$0xff]  }
 0x14b   :  { %3273 = vmatprep.subr.bf16.mxu1 %v4559_v6  ;;  %v4514_v6 = vld [vmem:[#allocation5 + $0x794] ss:$24 sps:$4 sm:$0xff]  }
 0x14c   :  { %2150 = vmatpush1.bf16.msra.mxu0 %v4413_v33  ;;  %v4466_v33 = vld [vmem:[#allocation5 + $0x494] ss:$24 sps:$4 sm:$0xff]  }
 0x14d   :  { %2151 = vmatprep.subr.bf16.mxu0 %v4418_v34  ;;  %v4592_v34 = vld [vmem:[#allocation8 + $0x154] ss:$12 sps:$4 sm:$0xff]  }
 0x14e   :  { %3274 = vmatpush1.bf16.msra.mxu1 %v4557_v4  ;;  %v4509_v4 = vld [vmem:[#allocation5 + $0x760] ss:$24 sps:$4 sm:$0xff]  }
 0x14f   :  { %3275 = vmatprep.subr.bf16.mxu1 %v4562_v8  ;;  %v4517_v8 = vld [vmem:[#allocation5 + $0x7c4] ss:$24 sps:$4 sm:$0xff]  }
 0x150   :  { %2152 = vmatpush1.bf16.msra.mxu0 %v4416_v35  ;;  %v4464_v35 = vld [vmem:[#allocation5 + $0x490] ss:$24 sps:$4 sm:$0xff]  }
 0x151   :  { %2153 = vmatprep.subr.bf16.mxu0 %v4421_v36  ;;  %v4590_v36 = vld [vmem:[#allocation8 + $0x150] ss:$12 sps:$4 sm:$0xff]  }
 0x152   :  { %3276 = vmatpush1.bf16.msra.mxu1 %v4560_v11  ;;  %v4523_v11 = vld [vmem:[#allocation5 + $0x7f4] ss:$24 sps:$4 sm:$0xff]  }
 0x153   :  { %3277 = vmatprep.subr.bf16.mxu1 %v4567_v12  ;;  %v4521_v12 = vld [vmem:[#allocation5 + $0x7f0] ss:$24 sps:$4 sm:$0xff]  }
 0x154   :  { %2154 = vmatpush1.bf16.msra.mxu0 %v4419_v37  ;;  %v4469_v37 = vld [vmem:[#allocation5 + $0x4c4] ss:$24 sps:$4 sm:$0xff]  }
 0x155   :  { %2155 = vmatprep.subr.bf16.mxu0 %v4424_v38  ;;  %v4597_v38 = vld [vmem:[#allocation8 + $0x16c] ss:$12 sps:$4 sm:$0xff]  }
 0x158   :  { %2156 = vmatpush1.bf16.msra.mxu0 %v4422_v40  ;;  %v4595_v40 = vld [vmem:[#allocation8 + $0x168] ss:$12 sps:$4 sm:$0xff]  }
 0x159   :  { %2157 = vmatprep.subr.bf16.mxu0 %v4427_v41  ;;  %v4472_v41 = vld [vmem:[#allocation5 + $0x4f4] ss:$24 sps:$4 sm:$0xff]  }
 0x15c   :  { %2158 = vmatpush1.bf16.msra.mxu0 %v4425_v44  ;;  %v4602_v44 = vld [vmem:[#allocation8 + $0x184] ss:$12 sps:$4 sm:$0xff]  }
 0x15d   :  { %2159 = vmatprep.subr.bf16.mxu0 %v4430_v45  ;;  %v4473_v45 = vld [vmem:[#allocation5 + $0x520] ss:$24 sps:$4 sm:$0xff]  }
 0x160   :  { %2160 = vmatpush1.bf16.msra.mxu0 %v4428_v49  ;;  %v4481_v49 = vld [vmem:[#allocation5 + $0x584] ss:$24 sps:$4 sm:$0xff]  }
 0x161   :  { %2161 = vmatprep.subr.bf16.mxu0 %v4433_v50  ;;  %v4479_v50 = vld [vmem:[#allocation5 + $0x580] ss:$24 sps:$4 sm:$0xff]  }
 0x164   :  { %2162 = vmatpush1.bf16.msra.mxu0 %v4431_v53  ;;  %v4487_v53 = vld [vmem:[#allocation5 + $0x5e4] ss:$24 sps:$4 sm:$0xff]  }
 0x165   :  { %2163 = vmatprep.subr.bf16.mxu0 %v4436_v54  ;;  %v4485_v54 = vld [vmem:[#allocation5 + $0x5e0] ss:$24 sps:$4 sm:$0xff]  }
 0x168   :  { %2164 = vmatpush1.bf16.msra.mxu0 %v4434_v57  ;;  %v4493_v57 = vld [vmem:[#allocation5 + $0x644] ss:$24 sps:$4 sm:$0xff]  }
 0x169   :  { %2165 = vmatprep.subr.bf16.mxu0 %v4439_v58  ;;  %v4491_v58 = vld [vmem:[#allocation5 + $0x640] ss:$24 sps:$4 sm:$0xff]  }
 0x16c   :  { %2166 = vmatpush1.bf16.msra.mxu0 %v4437_v61  ;;  %v4499_v61 = vld [vmem:[#allocation5 + $0x6a4] ss:$24 sps:$4 sm:$0xff]  }
 0x16d   :  { %2176 = vmatprep.subr.bf16.mxu0 %v4442_v62  ;;  %v4497_v62 = vld [vmem:[#allocation5 + $0x6a0] ss:$24 sps:$4 sm:$0xff]  }
 0x16f   :  { %2168 = vmatmul.mubr.bf16.vlgmr.msra.gmra.mrb[4].mxu0 %v5012_v5  ;;  %v4565_v5 = vld [vmem:[#allocation8 + $0xd8] ss:$12 sps:$4 sm:$0xff]  }
 0x170   :  { %2177 = vmatpush1.bf16.msra.mxu0 %v4440_v0  ;;  %2208 = vmatprep.mubr.bf16.mxu0 %v5020_v30  ;;  %v4454_v30 = vld [vmem:[#allocation5 + $0x3d4] ss:$24 sps:$4 sm:$0xff]   ;;  %v4500_v0 = vld [vmem:[#allocation5 + $0x6d0] ss:$24 sps:$4 sm:$0xff]  }
 0x171   :  { %2178 = vmatprep.subr.bf16.mxu0 %v4445_v1  ;;  %3278 = vmatpush1.bf16.msra.mxu1 %v4565_v5  ;;  %v4505_v1 = vld [vmem:[#allocation5 + $0x704] ss:$24 sps:$4 sm:$0xff]   ;;  %v4535_v5 = vld [vmem:[#allocation5 + $0x854] ss:$24 sps:$4 sm:$0xff]  }
 0x172   :  { %3279 = vmatprep.subr.bf16.mxu1 %v4572_v17  ;;  %v4533_v17 = vld [vmem:[#allocation5 + $0x850] ss:$24 sps:$4 sm:$0xff]  }
 0x174   :  { %2179 = vmatpush1.bf16.msra.mxu0 %v4443_v7  ;;  %v4512_v7 = vld [vmem:[#allocation5 + $0x790] ss:$24 sps:$4 sm:$0xff]  }
 0x175   :  { %2180 = vmatprep.subr.bf16.mxu0 %v4448_v10  ;;  %3280 = vmatpush1.bf16.msra.mxu1 %v4570_v20  ;;  %v4515_v10 = vld [vmem:[#allocation5 + $0x7c0] ss:$24 sps:$4 sm:$0xff]   ;;  %v4547_v20 = vld [vmem:[#allocation5 + $0x8b4] ss:$24 sps:$4 sm:$0xff]  }
 0x176   :  { %3281 = vmatprep.subr.bf16.mxu1 %v4577_v21  ;;  %v4545_v21 = vld [vmem:[#allocation5 + $0x8b0] ss:$24 sps:$4 sm:$0xff]  }
 0x178   :  { %2181 = vmatpush1.bf16.msra.mxu0 %v4446_v14  ;;  %v4529_v14 = vld [vmem:[#allocation5 + $0x824] ss:$24 sps:$4 sm:$0xff]  }
 0x179   :  { %2182 = vmatprep.subr.bf16.mxu0 %v4451_v16  ;;  %3282 = vmatpush1.bf16.msra.mxu1 %v4575_v24  ;;  %v4527_v16 = vld [vmem:[#allocation5 + $0x820] ss:$24 sps:$4 sm:$0xff]  }
 0x17a   :  { %3283 = vmatprep.subr.bf16.mxu1 %v4582_v28  ;;  %v4563_v24 = vld [vmem:[#allocation8 + $0xc8] ss:$12 sps:$4 sm:$0xff]   ;;  %v398_v28 = vlaneseq }
 0x17c   :  { %2183 = vmatpush1.bf16.msra.mxu0 %v4449_v18  ;;  %v4541_v18 = vld [vmem:[#allocation5 + $0x884] ss:$24 sps:$4 sm:$0xff]  }
 0x17d   :  { %2184 = vmatprep.subr.bf16.mxu0 %v4454_v30  ;;  %3284 = vmatpush1.bf16.msra.mxu1 %v4580_v29  ;;  %v4539_v30 = vld [vmem:[#allocation5 + $0x880] ss:$24 sps:$4 sm:$0xff]  }
 0x17e   :  { %3285 = vmatprep.subr.bf16.mxu1 %v4587_v48  ;;  %v4574_v29 = vld [vmem:[#allocation8 + $0x38] ss:$12 sps:$4 sm:$0xff]   ;;  %v4579_v48 = vld [vmem:[#allocation8 + $0x50] ss:$12 sps:$4 sm:$0xff]  }
 0x180   :  { %2185 = vmatpush1.bf16.msra.mxu0 %v4452_v22  ;;  %v4553_v22 = vld [vmem:[#allocation5 + $0x8e4] ss:$24 sps:$4 sm:$0xff]  }
 0x181   :  { %2186 = vmatprep.subr.bf16.mxu0 %v4457_v23  ;;  %3286 = vmatpush1.bf16.msra.mxu1 %v4585_v32  ;;  %v4551_v23 = vld [vmem:[#allocation5 + $0x8e0] ss:$24 sps:$4 sm:$0xff]   ;;  %v5053_v32 = vshrl.u32 %v398_v28, 7 }
 0x182   :  { %3287 = vmatprep.subr.bf16.mxu1 %v4592_v34  ;;  %v4629_v28 = vld [vmem:[#allocation8 + $0x25c] ss:$12 sps:$4 sm:$0xff]  }
 0x183   :  { %v5056_v34 = vsub.s32 0, %v5053_v32 }
 0x184   :  { %2187 = vmatpush1.bf16.msra.mxu0 %v4455_v25  ;;  %v4564_v25 = vld [vmem:[#allocation8 + $0x8] ss:$12 sps:$4 sm:$0xff]  }
 0x185   :  { %2188 = vmatprep.subr.bf16.mxu0 %v4460_v13  ;;  %3288 = vmatpush1.bf16.msra.mxu1 %v4590_v36  ;;  %v4568_v13 = vld [vmem:[#allocation8 + $0xe0] ss:$12 sps:$4 sm:$0xff]   ;;  %v412_v36 = vsub.s32 3, %v5053_v32 }
 0x186   :  { %3289 = vmatprep.subr.bf16.mxu1 %v4597_v38  ;;  %v4588_v38 = vld [vmem:[#allocation8 + $0x140] ss:$12 sps:$4 sm:$0xff]  }
 0x188   :  { %2189 = vmatpush1.bf16.msra.mxu0 %v4458_v26  ;;  %v4569_v26 = vld [vmem:[#allocation8 + $0x20] ss:$12 sps:$4 sm:$0xff]  }
 0x189   :  { %2190 = vmatprep.subr.bf16.mxu0 %v4463_v27  ;;  %3290 = vmatpush1.bf16.msra.mxu1 %v4595_v40  ;;  %v4573_v27 = vld [vmem:[#allocation8 + $0xf8] ss:$12 sps:$4 sm:$0xff]  }
 0x18a   :  { %3300 = vmatprep.subr.bf16.mxu1 %v4602_v44 }
 0x18c   :  { %2191 = vmatpush1.bf16.msra.mxu0 %v4461_v31  ;;  %v4578_v31 = vld [vmem:[#allocation8 + $0x110] ss:$12 sps:$4 sm:$0xff]  }
 0x18d   :  { %2192 = vmatprep.subr.bf16.mxu0 %v4466_v33  ;;  %v4583_v33 = vld [vmem:[#allocation8 + $0x128] ss:$12 sps:$4 sm:$0xff]  }
 0x190   :  { %2193 = vmatpush1.bf16.msra.mxu0 %v4464_v35  ;;  %v5058_v35 = vld [vmem:[#allocation7] sm:$0x3f] }
 0x191   :  { %2194 = vmatprep.subr.bf16.mxu0 %v4469_v37  ;;  %v4584_v37 = vld [vmem:[#allocation8 + $0x68] ss:$12 sps:$4 sm:$0xff]  }
 0x194   :  { %2195 = vmatpush1.bf16.msra.mxu0 %v4467_v39  ;;  %v401_v39 = vrot.slane %v5058_v35, %v5056_v34 }
 0x195   :  { %2196 = vmatprep.subr.bf16.mxu0 %v4472_v41  ;;  %v413_v41 = vrot.slane %v5058_v35, %v412_v36  ;;  %v4630_v36 = vld [vmem:[#allocation8 + $0x270] ss:$12 sps:$4 sm:$0xff]  }
 0x198   :  { %2197 = vmatpush1.bf16.msra.mxu0 %v4470_v42  ;;  %v4589_v42 = vld [vmem:[#allocation8 + $0x80] ss:$12 sps:$4 sm:$0xff]  }
 0x199   :  { %2198 = vmatprep.subr.bf16.mxu0 %v4475_v43  ;;  %v4593_v43 = vld [vmem:[#allocation8 + $0x158] ss:$12 sps:$4 sm:$0xff]  }
 0x19c   :  { %2199 = vmatpush1.bf16.msra.mxu0 %v4473_v45 }
 0x19d   :  { %2200 = vmatprep.subr.bf16.mxu0 %v4478_v46 }
 0x1a0   :  { %2201 = vmatpush1.bf16.msra.mxu0 %v4476_v47 }
 0x1a1   :  { %2202 = vmatprep.subr.bf16.mxu0 %v4481_v49 }
 0x1a4   :  { %2203 = vmatpush1.bf16.msra.mxu0 %v4479_v50 }
 0x1a5   :  { %2204 = vmatprep.subr.bf16.mxu0 %v4484_v51 }
 0x1a8   :  { %2205 = vmatpush1.bf16.msra.mxu0 %v4482_v52 }
 0x1a9   :  { %2206 = vmatprep.subr.bf16.mxu0 %v4487_v53 }
 0x1ac   :  { %2207 = vmatpush1.bf16.msra.mxu0 %v4485_v54  ;;  %v4594_v54 = vld [vmem:[#allocation8 + $0x98] ss:$12 sps:$4 sm:$0xff]  }
 0x1ad   :  { %2217 = vmatprep.subr.bf16.mxu0 %v4490_v55 }
 0x1af   :  { %2209 = vmatmul.mubr.bf16.vlgmr.msra.gmra.mrb[4].mxu0 %v5026_v9  ;;  %v4503_v9 = vld [vmem:[#allocation5 + $0x700] ss:$24 sps:$4 sm:$0xff]  }
 0x1b0   :  { %2218 = vmatpush1.bf16.msra.mxu0 %v4488_v56  ;;  %2249 = vmatprep.mubr.bf16.mxu0 %v5032_v15  ;;  %v4506_v15 = vld [vmem:[#allocation5 + $0x730] ss:$24 sps:$4 sm:$0xff]  }
 0x1b1   :  { %2219 = vmatprep.subr.bf16.mxu0 %v4493_v57  ;;  %v4598_v57 = vld [vmem:[#allocation8 + $0x170] ss:$12 sps:$4 sm:$0xff]  }
 0x1b4   :  { %2220 = vmatpush1.bf16.msra.mxu0 %v4491_v58  ;;  %v4599_v58 = vld [vmem:[#allocation8 + $0xb0] ss:$12 sps:$4 sm:$0xff]  }
 0x1b5   :  { %2221 = vmatprep.subr.bf16.mxu0 %v4496_v59  ;;  %v4675_v59 = vld [vmem:[#allocation8 + $0x3c8] ss:$12 sps:$4 sm:$0xff]  }
 0x1b8   :  { %2222 = vmatpush1.bf16.msra.mxu0 %v4494_v60  ;;  %v5071_v60 = vpop.permute.xlu0 %2267 }
 0x1b9   :  { %2223 = vmatprep.subr.bf16.mxu0 %v4499_v61 }
 0x1bc   :  { %2224 = vmatpush1.bf16.msra.mxu0 %v4497_v62 }
 0x1bd   :  { %2225 = vmatprep.subr.bf16.mxu0 %v4502_v63 }
 0x1c0   :  { %2226 = vmatpush1.bf16.msra.mxu0 %v4500_v0 }
 0x1c1   :  { %2227 = vmatprep.subr.bf16.mxu0 %v4505_v1 }
 0x1c4   :  { %2228 = vmatpush1.bf16.msra.mxu0 %v4503_v9 }
 0x1c5   :  { %2229 = vmatprep.subr.bf16.mxu0 %v4508_v2 }
 0x1c8   :  { %2230 = vmatpush1.bf16.msra.mxu0 %v4506_v15  ;;  %v4600_v15 = vld [vmem:[#allocation8 + $0x180] ss:$12 sps:$4 sm:$0xff]  }
 0x1c9   :  { %2231 = vmatprep.subr.bf16.mxu0 %v4511_v3 }
 0x1cc   :  { %2232 = vmatpush1.bf16.msra.mxu0 %v4509_v4  ;;  %v4605_v4 = vld [vmem:[#allocation8 + $0x19c] ss:$12 sps:$4 sm:$0xff]  }
 0x1cd   :  { %2233 = vmatprep.subr.bf16.mxu0 %v4514_v6  ;;  %v4676_v6 = vld [vmem:[#allocation8 + $0x308] ss:$12 sps:$4 sm:$0xff]  }
 0x1d0   :  { %2234 = vmatpush1.bf16.msra.mxu0 %v4512_v7 }
 0x1d1   :  { %2235 = vmatprep.subr.bf16.mxu0 %v4517_v8  ;;  %v4680_v8 = vld [vmem:[#allocation8 + $0x3e0] ss:$12 sps:$4 sm:$0xff]  }
 0x1d4   :  { %2236 = vmatpush1.bf16.msra.mxu0 %v4515_v10  ;;  %v4603_v10 = vld [vmem:[#allocation8 + $0x198] ss:$12 sps:$4 sm:$0xff]  }
 0x1d5   :  { %2237 = vmatprep.subr.bf16.mxu0 %v4523_v11  ;;  %v4608_v11 = vld [vmem:[#allocation8 + $0x1b4] ss:$12 sps:$4 sm:$0xff]  }
 0x1d8   :  { %2238 = vmatpush1.bf16.msra.mxu0 %v4521_v12  ;;  %v4681_v12 = vld [vmem:[#allocation8 + $0x320] ss:$12 sps:$4 sm:$0xff]  }
 0x1d9   :  { %2239 = vmatprep.subr.bf16.mxu0 %v4529_v14  ;;  %v4685_v14 = vld [vmem:[#allocation8 + $0x3f8] ss:$12 sps:$4 sm:$0xff]  }
 0x1dc   :  { %2240 = vmatpush1.bf16.msra.mxu0 %v4527_v16  ;;  %v4606_v16 = vld [vmem:[#allocation8 + $0x1b0] ss:$12 sps:$4 sm:$0xff]  }
 0x1dd   :  { %2241 = vmatprep.subr.bf16.mxu0 %v4535_v5  ;;  %v4611_v5 = vld [vmem:[#allocation8 + $0x1cc] ss:$12 sps:$4 sm:$0xff]  }
 0x1e0   :  { %2242 = vmatpush1.bf16.msra.mxu0 %v4533_v17  ;;  %v4686_v17 = vld [vmem:[#allocation8 + $0x338] ss:$12 sps:$4 sm:$0xff]  }
 0x1e1   :  { %2243 = vmatprep.subr.bf16.mxu0 %v4541_v18  ;;  %v4609_v18 = vld [vmem:[#allocation8 + $0x1c8] ss:$12 sps:$4 sm:$0xff]  }
 0x1e4   :  { %2244 = vmatpush1.bf16.msra.mxu0 %v4539_v30  ;;  %v4614_v30 = vld [vmem:[#allocation8 + $0x1e4] ss:$12 sps:$4 sm:$0xff]  }
 0x1e5   :  { %2245 = vmatprep.subr.bf16.mxu0 %v4547_v20  ;;  %v4612_v20 = vld [vmem:[#allocation8 + $0x1e0] ss:$12 sps:$4 sm:$0xff]  }
 0x1e8   :  { %2246 = vmatpush1.bf16.msra.mxu0 %v4545_v21  ;;  %v4617_v21 = vld [vmem:[#allocation8 + $0x1fc] ss:$12 sps:$4 sm:$0xff]  }
 0x1e9   :  { %2247 = vmatprep.subr.bf16.mxu0 %v4553_v22  ;;  %v4615_v22 = vld [vmem:[#allocation8 + $0x1f8] ss:$12 sps:$4 sm:$0xff]  }
 0x1ec   :  { %2248 = vmatpush1.bf16.msra.mxu0 %v4551_v23  ;;  %v4620_v23 = vld [vmem:[#allocation8 + $0x214] ss:$12 sps:$4 sm:$0xff]  }
 0x1ed   :  { %3980 = vmatprep.subr.bf16.mxu0 %v4563_v24  ;;  %v4618_v24 = vld [vmem:[#allocation8 + $0x210] ss:$12 sps:$4 sm:$0xff]  }
 0x1ef   :  { %2250 = vmatmul.mubr.bf16.vlgmr.msra.gmra.mrb[4].mxu0 %v5043_v19  ;;  %v5061_v19 = vsub.s32 1, %v5053_v32 }
 0x1f0   :  { %3981 = vmatpush3.bf16.msra.mxu0 %v4564_v25  ;;  %v4623_v25 = vld [vmem:[#allocation8 + $0x22c] ss:$12 sps:$4 sm:$0xff]  }
 0x1f1   :  { %3982 = vmatprep.subr.bf16.mxu0 %v4568_v13  ;;  %v405_v40 = vrot.slane %v5058_v35, %v5061_v19  ;;  %v4621_v13 = vld [vmem:[#allocation8 + $0x228] ss:$12 sps:$4 sm:$0xff]  }
 0x1f4   :  { %3983 = vmatpush3.bf16.msra.mxu0 %v4569_v26  ;;  %v4626_v26 = vld [vmem:[#allocation8 + $0x244] ss:$12 sps:$4 sm:$0xff]  }
 0x1f5   :  { %3984 = vmatprep.subr.bf16.mxu0 %v4573_v27  ;;  %v4624_v27 = vld [vmem:[#allocation8 + $0x240] ss:$12 sps:$4 sm:$0xff]  }
 0x1f8   :  { %3985 = vmatpush3.bf16.msra.mxu0 %v4574_v29  ;;  %v5080_v29 = vsub.s32 2, %v5053_v32 }
 0x1f9   :  { %3986 = vmatprep.subr.bf16.mxu0 %v4578_v31  ;;  %v4627_v31 = vld [vmem:[#allocation8 + $0x258] ss:$12 sps:$4 sm:$0xff]  }
 0x1fc   :  { %3987 = vmatpush3.bf16.msra.mxu0 %v4579_v48  ;;  %v4632_v48 = vld [vmem:[#allocation8 + $0x274] ss:$12 sps:$4 sm:$0xff]  }
 0x1fd   :  { %3988 = vmatprep.subr.bf16.mxu0 %v4583_v33  ;;  %v409_v33 = vrot.slane %v5058_v35, %v5080_v29 }
 0x200   :  { %3989 = vmatpush3.bf16.msra.mxu0 %v4584_v37  ;;  %v4635_v37 = vld [vmem:[#allocation8 + $0x28c] ss:$12 sps:$4 sm:$0xff]  }
 0x201   :  { %3990 = vmatprep.subr.bf16.mxu0 %v4588_v38 }
 0x202   :  { %v2005_v44 = vpop.f32.mrb[0].mxu0 }
 0x203   :  { %v5069_v45 = vpop.f32.mrb[0].mxu1  ;;  %v4046_v46 = vadd.f32 %v2005_v44, %v401_v39  ;;  %v2007_v47 = vpop.f32.mrb[1].mxu0  ;;  %v4633_v39 = vld [vmem:[#allocation8 + $0x288] ss:$12 sps:$4 sm:$0xff]  }
 0x204   :  { %v2130_v49 = vpop.f32.mrb[1].mxu1  ;;  %v4047_v50 = vadd.f32 %v2007_v47, %v405_v40  ;;  %v2009_v52 = vpop.f32.mrb[2].mxu0  ;;  %3991 = vmatpush3.bf16.msra.mxu0 %v4589_v42  ;;  %v4048_v38 = vadd.f32 %v5069_v45, %v409_v33  ;;  %v4638_v40 = vld [vmem:[#allocation8 + $0x2a4] ss:$12 sps:$4 sm:$0xff]   ;;  %v4641_v44 = vld [vmem:[#allocation8 + $0x2bc] ss:$12 sps:$4 sm:$0xff]  }
 0x205   :  { %v4049_v51 = vadd.f32 %v2130_v49, %v413_v41  ;;  %v2132_v53 = vpop.f32.mrb[2].mxu1  ;;  %4728 = vtanh.f32 %v4046_v46  ;;  %v2010_v55 = vpop.f32.mrb[3].mxu0  ;;  %3992 = vmatprep.subr.bf16.mxu0 %v4593_v43  ;;  %v4690_v41 = vld [vmem:[#allocation8 + $0x410] ss:$12 sps:$4 sm:$0xff]   ;;  %v4636_v43 = vld [vmem:[#allocation8 + $0x2a0] ss:$12 sps:$4 sm:$0xff]  }
 0x206   :  { %v2133_v56 = vpop.f32.mrb[3].mxu1  ;;  %4730 = vtanh.f32 %v4047_v50  ;;  %v4691_v42 = vld [vmem:[#allocation8 + $0x350] ss:$12 sps:$4 sm:$0xff]   ;;  %v4695_v46 = vld [vmem:[#allocation8 + $0x428] ss:$12 sps:$4 sm:$0xff]  }
 0x207   :  { %4732 = vtanh.f32 %v4049_v51  ;;  %v4696_v47 = vld [vmem:[#allocation8 + $0x368] ss:$12 sps:$4 sm:$0xff]   ;;  %v4700_v49 = vld [vmem:[#allocation8 + $0x440] ss:$12 sps:$4 sm:$0xff]   ;;  %v4639_v50 = vld [vmem:[#allocation8 + $0x2b8] ss:$12 sps:$4 sm:$0xff]  }
 0x208   :  { %3993 = vmatpush3.bf16.msra.mxu0 %v4594_v54  ;;  %4734 = vtanh.f32 %v4048_v38  ;;  %v4644_v45 = vld [vmem:[#allocation8 + $0x2d4] ss:$12 sps:$4 sm:$0xff]   ;;  %v4705_v52 = vld [vmem:[#allocation8 + $0x458] ss:$12 sps:$4 sm:$0xff]   ;;  %v4642_v53 = vld [vmem:[#allocation8 + $0x2d0] ss:$12 sps:$4 sm:$0xff]  }
 0x209   :  { %3994 = vmatprep.subr.bf16.mxu0 %v4598_v57  ;;  %v4701_v51 = vld [vmem:[#allocation8 + $0x380] ss:$12 sps:$4 sm:$0xff]   ;;  %v4706_v55 = vld [vmem:[#allocation8 + $0x398] ss:$12 sps:$4 sm:$0xff]   ;;  %v4710_v57 = vld [vmem:[#allocation8 + $0x470] ss:$12 sps:$4 sm:$0xff]  }
 0x20a   :  { %v4647_v54 = vld [vmem:[#allocation8 + $0x2ec] ss:$12 sps:$4 sm:$0xff]   ;;  %v4707_v33 = vld [vmem:[#allocation8 + $0x468] ss:$12 sps:$4 sm:$0xff]   ;;  %v420_v38 = vsub.s32 5, %v5053_v32 }
 0x20c   :  { %3995 = vmatpush3.bf16.msra.mxu0 %v4599_v58  ;;  %v4645_v58 = vld [vmem:[#allocation8 + $0x2e8] ss:$12 sps:$4 sm:$0xff]  }
 0x20d   :  { %4024 = vmatprep.subr.bf16.mxu0 %v4675_v59 }
 0x20f   :  { %v4729_v61 = vpop.eup %4728 }
 0x210   :  { %v4731_v62 = vpop.eup %4730  ;;  %v2270_v63 = vmul.f32 %v4729_v61, %v5071_v60  ;;  %v4650_v61 = vld [vmem:[#allocation8 + $0x304] ss:$12 sps:$4 sm:$0xff]  }
 0x211   :  { %v4733_v0 = vpop.eup %4732  ;;  %v2271_v1 = vmul.f32 %v4731_v62, %v5071_v60  ;;  %v4711_v62 = vld [vmem:[#allocation8 + $0x3b0] ss:$12 sps:$4 sm:$0xff]  }
 0x212   :  { %v2273_v9 = vmul.f32 %v4733_v0, %v5071_v60  ;;  %v2276_v3 = vpack.c.bf16 %v2270_v63, %v2270_v63  ;;  %v4735_v56 = vpop.eup %4734  ;;  %v4648_v63 = vld [vmem:[#allocation8 + $0x300] ss:$12 sps:$4 sm:$0xff]  }
 0x213   :  { %v2277_v2 = vpack.c.bf16 %v2271_v1, %v2271_v1  ;;  %v2272_v59 = vmul.f32 %v4735_v56, %v5071_v60  ;;  %v4653_v1 = vld [vmem:[#allocation8 + $0x31c] ss:$12 sps:$4 sm:$0xff]   ;;  %v4717_v56 = vld [vmem:[#allocation8 + $0x1b8] ss:$12 sps:$4 sm:$0xff]  }
 0x214   :  { %v5076_v7 = vpack.c.bf16 %v2273_v9, %v2273_v9  ;;  %v4651_v9 = vld [vmem:[#allocation8 + $0x318] ss:$12 sps:$4 sm:$0xff]  }
 0x215   :  { %3291 = vmatprep.mubr.bf16.mxu1 %v2277_v2  ;;  %3414 = vmatprep.mubr.bf16.mxu0 %v2277_v2  ;;  %v5086_v0 = vpack.c.bf16 %v2272_v59, %v2272_v59  ;;  %v4656_v2 = vld [vmem:[#allocation8 + $0x334] ss:$12 sps:$4 sm:$0xff]  }
 0x216   :  { %3292 = vmatmul.mubr.bf16.vlgmr.msra.gmra.mrb[4].mxu1 %v2276_v3  ;;  %3415 = vmatmul.mubr.bf16.vlgmr.msra.gmra.mrb[8].mxu0 %v2276_v3  ;;  %v4659_v3 = vld [vmem:[#allocation8 + $0x34c] ss:$12 sps:$4 sm:$0xff]   ;;  %v4721_v59 = vld [vmem:[#allocation8 + $0x1e8] ss:$12 sps:$4 sm:$0xff]  }
 0x217   :  { %3301 = vmatpush1.bf16.msra.mxu1 %v4600_v15  ;;  %3332 = vmatprep.mubr.bf16.mxu1 %v5076_v7  ;;  %v4654_v15 = vld [vmem:[#allocation8 + $0x330] ss:$12 sps:$4 sm:$0xff]  }
 0x218   :  { %3302 = vmatprep.subr.bf16.mxu1 %v4605_v4  ;;  %4025 = vmatpush3.bf16.msra.mxu0 %v4676_v6  ;;  %v4657_v4 = vld [vmem:[#allocation8 + $0x348] ss:$12 sps:$4 sm:$0xff]   ;;  %v4662_v6 = vld [vmem:[#allocation8 + $0x364] ss:$12 sps:$4 sm:$0xff]  }
 0x219   :  { %4026 = vmatprep.subr.bf16.mxu0 %v4680_v8  ;;  %v4660_v8 = vld [vmem:[#allocation8 + $0x360] ss:$12 sps:$4 sm:$0xff]  }
 0x21b   :  { %3303 = vmatpush1.bf16.msra.mxu1 %v4603_v10  ;;  %v4665_v10 = vld [vmem:[#allocation8 + $0x37c] ss:$12 sps:$4 sm:$0xff]  }
 0x21c   :  { %3304 = vmatprep.subr.bf16.mxu1 %v4608_v11  ;;  %4027 = vmatpush3.bf16.msra.mxu0 %v4681_v12  ;;  %v4663_v11 = vld [vmem:[#allocation8 + $0x378] ss:$12 sps:$4 sm:$0xff]   ;;  %v4668_v12 = vld [vmem:[#allocation8 + $0x394] ss:$12 sps:$4 sm:$0xff]  }
 0x21d   :  { %4028 = vmatprep.subr.bf16.mxu0 %v4685_v14  ;;  %v4666_v14 = vld [vmem:[#allocation8 + $0x390] ss:$12 sps:$4 sm:$0xff]  }
 0x21f   :  { %3305 = vmatpush1.bf16.msra.mxu1 %v4606_v16  ;;  %v4671_v16 = vld [vmem:[#allocation8 + $0x3ac] ss:$12 sps:$4 sm:$0xff]  }
 0x220   :  { %3306 = vmatprep.subr.bf16.mxu1 %v4611_v5  ;;  %4029 = vmatpush3.bf16.msra.mxu0 %v4686_v17  ;;  %v4669_v5 = vld [vmem:[#allocation8 + $0x3a8] ss:$12 sps:$4 sm:$0xff]   ;;  %v4674_v17 = vld [vmem:[#allocation8 + $0x3c4] ss:$12 sps:$4 sm:$0xff]  }
 0x221   :  { %4030 = vmatprep.subr.bf16.mxu0 %v4690_v41 }
 0x223   :  { %3307 = vmatpush1.bf16.msra.mxu1 %v4609_v18  ;;  %v4672_v18 = vld [vmem:[#allocation8 + $0x3c0] ss:$12 sps:$4 sm:$0xff]  }
 0x224   :  { %3308 = vmatprep.subr.bf16.mxu1 %v4614_v30  ;;  %4031 = vmatpush3.bf16.msra.mxu0 %v4691_v42  ;;  %v4679_v30 = vld [vmem:[#allocation8 + $0x3dc] ss:$12 sps:$4 sm:$0xff]  }
 0x225   :  { %4032 = vmatprep.subr.bf16.mxu0 %v4695_v46 }
 0x227   :  { %3309 = vmatpush1.bf16.msra.mxu1 %v4612_v20  ;;  %v4677_v20 = vld [vmem:[#allocation8 + $0x3d8] ss:$12 sps:$4 sm:$0xff]  }
 0x228   :  { %3310 = vmatprep.subr.bf16.mxu1 %v4617_v21  ;;  %4033 = vmatpush3.bf16.msra.mxu0 %v4696_v47  ;;  %v4684_v21 = vld [vmem:[#allocation8 + $0x3f4] ss:$12 sps:$4 sm:$0xff]  }
 0x229   :  { %4034 = vmatprep.subr.bf16.mxu0 %v4700_v49 }
 0x22b   :  { %3311 = vmatpush1.bf16.msra.mxu1 %v4615_v22  ;;  %v4682_v22 = vld [vmem:[#allocation8 + $0x3f0] ss:$12 sps:$4 sm:$0xff]  }
 0x22c   :  { %3312 = vmatprep.subr.bf16.mxu1 %v4620_v23  ;;  %4035 = vmatpush3.bf16.msra.mxu0 %v4701_v51  ;;  %v4689_v23 = vld [vmem:[#allocation8 + $0x40c] ss:$12 sps:$4 sm:$0xff]  }
 0x22d   :  { %4036 = vmatprep.subr.bf16.mxu0 %v4705_v52 }
 0x22f   :  { %3313 = vmatpush1.bf16.msra.mxu1 %v4618_v24  ;;  %v4687_v24 = vld [vmem:[#allocation8 + $0x408] ss:$12 sps:$4 sm:$0xff]  }
 0x230   :  { %3314 = vmatprep.subr.bf16.mxu1 %v4623_v25  ;;  %4037 = vmatpush3.bf16.msra.mxu0 %v4706_v55  ;;  %v4694_v25 = vld [vmem:[#allocation8 + $0x424] ss:$12 sps:$4 sm:$0xff]  }
 0x231   :  { %4038 = vmatprep.subr.bf16.mxu0 %v4710_v57  ;;  %v4716_v55 = vld [vmem:[#allocation8 + $0x278] ss:$12 sps:$4 sm:$0xff]   ;;  %v4718_v57 = vld [vmem:[#allocation8 + $0x290] ss:$12 sps:$4 sm:$0xff]  }
 0x233   :  { %3315 = vmatpush1.bf16.msra.mxu1 %v4621_v13  ;;  %v4692_v13 = vld [vmem:[#allocation8 + $0x420] ss:$12 sps:$4 sm:$0xff]  }
 0x234   :  { %3316 = vmatprep.subr.bf16.mxu1 %v4626_v26  ;;  %4039 = vmatpush3.bf16.msra.mxu0 %v4711_v62  ;;  %v4699_v26 = vld [vmem:[#allocation8 + $0x43c] ss:$12 sps:$4 sm:$0xff]   ;;  %v4723_v62 = vld [vmem:[#allocation8 + $0x200] ss:$12 sps:$4 sm:$0xff]  }
 0x237   :  { %3317 = vmatpush1.bf16.msra.mxu1 %v4624_v27  ;;  %v4697_v27 = vld [vmem:[#allocation8 + $0x438] ss:$12 sps:$4 sm:$0xff]  }
 0x238   :  { %3318 = vmatprep.subr.bf16.mxu1 %v4629_v28  ;;  %v4704_v28 = vld [vmem:[#allocation8 + $0x454] ss:$12 sps:$4 sm:$0xff]  }
 0x23b   :  { %3319 = vmatpush1.bf16.msra.mxu1 %v4627_v31  ;;  %v4702_v31 = vld [vmem:[#allocation8 + $0x450] ss:$12 sps:$4 sm:$0xff]  }
 0x23c   :  { %3320 = vmatprep.subr.bf16.mxu1 %v4632_v48  ;;  %v4709_v48 = vld [vmem:[#allocation8 + $0x46c] ss:$12 sps:$4 sm:$0xff]  }
 0x23f   :  { %3321 = vmatpush1.bf16.msra.mxu1 %v4630_v36  ;;  %v4712_v36 = vld [vmem:[#allocation8 + $0x248] ss:$12 sps:$4 sm:$0xff]  }
 0x240   :  { %3322 = vmatprep.subr.bf16.mxu1 %v4635_v37  ;;  %v416_v37 = vsub.s32 4, %v5053_v32  ;;  %v4713_v32 = vld [vmem:[#allocation8 + $0x188] ss:$12 sps:$4 sm:$0xff]  }
 0x243   :  { %3323 = vmatpush1.bf16.msra.mxu1 %v4633_v39  ;;  %v417_v39 = vrot.slane %v5058_v35, %v416_v37 }
 0x244   :  { %3324 = vmatprep.subr.bf16.mxu1 %v4638_v40  ;;  %v421_v40 = vrot.slane %v5058_v35, %v420_v38  ;;  %v4715_v35 = vld [vmem:[#allocation8 + $0x1a0] ss:$12 sps:$4 sm:$0xff]  }
 0x247   :  { %3325 = vmatpush1.bf16.msra.mxu1 %v4636_v43 }
 0x248   :  { %3326 = vmatprep.subr.bf16.mxu1 %v4641_v44 }
 0x24b   :  { %3327 = vmatpush1.bf16.msra.mxu1 %v4639_v50 }
 0x24c   :  { %3328 = vmatprep.subr.bf16.mxu1 %v4644_v45 }
 0x24f   :  { %3329 = vmatpush1.bf16.msra.mxu1 %v4642_v53 }
 0x250   :  { %3330 = vmatprep.subr.bf16.mxu1 %v4647_v54  ;;  %v4714_v54 = vld [vmem:[#allocation8 + $0x260] ss:$12 sps:$4 sm:$0xff]  }
 0x253   :  { %3331 = vmatpush1.bf16.msra.mxu1 %v4645_v58  ;;  %v4720_v58 = vld [vmem:[#allocation8 + $0x2a8] ss:$12 sps:$4 sm:$0xff]  }
 0x254   :  { %3341 = vmatprep.subr.bf16.mxu1 %v4650_v61  ;;  %v4722_v61 = vld [vmem:[#allocation8 + $0x2c0] ss:$12 sps:$4 sm:$0xff]  }
 0x256   :  { %3333 = vmatmul.mubr.bf16.vlgmr.msra.gmra.mrb[4].mxu1 %v5086_v0 }
 0x257   :  { %3342 = vmatpush1.bf16.msra.mxu1 %v4648_v63  ;;  %v4724_v63 = vld [vmem:[#allocation8 + $0x2d8] ss:$12 sps:$4 sm:$0xff]  }
 0x258   :  { %3343 = vmatprep.subr.bf16.mxu1 %v4653_v1 }
 0x25b   :  { %3344 = vmatpush1.bf16.msra.mxu1 %v4651_v9  ;;  %v4725_v9 = vld [vmem:[#allocation8 + $0x218] ss:$12 sps:$4 sm:$0xff]  }
 0x25c   :  { %3345 = vmatprep.subr.bf16.mxu1 %v4656_v2 }
 0x25f   :  { %3346 = vmatpush1.bf16.msra.mxu1 %v4654_v15 }
 0x260   :  { %3347 = vmatprep.subr.bf16.mxu1 %v4659_v3  ;;  %v4726_v3 = vld [vmem:[#allocation8 + $0x2f0] ss:$12 sps:$4 sm:$0xff]  }
 0x263   :  { %3348 = vmatpush1.bf16.msra.mxu1 %v4657_v4 }
 0x264   :  { %3349 = vmatprep.subr.bf16.mxu1 %v4662_v6  ;;  %v4727_v6 = vld [vmem:[#allocation8 + $0x230] ss:$12 sps:$4 sm:$0xff]  }
 0x267   :  { %3350 = vmatpush1.bf16.msra.mxu1 %v4660_v8  ;;  %v2474_v8 = vld [vmem:[#allocation10] sm:$0x7] }
 0x268   :  { %3351 = vmatprep.subr.bf16.mxu1 %v4665_v10  ;;  %v2479_v10 = vrot.slane %v2474_v8, %v5056_v34 }
 0x26b   :  { %3352 = vmatpush1.bf16.msra.mxu1 %v4663_v11  ;;  %v3505_v11 = vld [vmem:[#allocation11] sm:$0x7] }
 0x26c   :  { %3353 = vmatprep.subr.bf16.mxu1 %v4668_v12  ;;  %v2483_v12 = vrot.slane %v2474_v8, %v5061_v19 }
 0x26f   :  { %3354 = vmatpush1.bf16.msra.mxu1 %v4666_v14 }
 0x270   :  { %3355 = vmatprep.subr.bf16.mxu1 %v4671_v16 }
 0x273   :  { %3356 = vmatpush1.bf16.msra.mxu1 %v4669_v5 }
 0x274   :  { %3357 = vmatprep.subr.bf16.mxu1 %v4674_v17  ;;  %v3510_v17 = vrot.slane %v3505_v11, %v5056_v34 }
 0x277   :  { %3358 = vmatpush1.bf16.msra.mxu1 %v4672_v18 }
 0x278   :  { %3359 = vmatprep.subr.bf16.mxu1 %v4679_v30 }
 0x27b   :  { %3360 = vmatpush1.bf16.msra.mxu1 %v4677_v20 }
 0x27c   :  { %3361 = vmatprep.subr.bf16.mxu1 %v4684_v21  ;;  %v3514_v21 = vrot.slane %v3505_v11, %v5061_v19 }
 0x27f   :  { %3362 = vmatpush1.bf16.msra.mxu1 %v4682_v22 }
 0x280   :  { %3363 = vmatprep.subr.bf16.mxu1 %v4689_v23 }
 0x283   :  { %3364 = vmatpush1.bf16.msra.mxu1 %v4687_v24 }
 0x284   :  { %3365 = vmatprep.subr.bf16.mxu1 %v4694_v25 }
 0x287   :  { %3366 = vmatpush1.bf16.msra.mxu1 %v4692_v13 }
 0x288   :  { %3367 = vmatprep.subr.bf16.mxu1 %v4699_v26 }
 0x28b   :  { %3368 = vmatpush1.bf16.msra.mxu1 %v4697_v27 }
 0x28c   :  { %3369 = vmatprep.subr.bf16.mxu1 %v4704_v28 }
 0x28f   :  { %3370 = vmatpush1.bf16.msra.mxu1 %v4702_v31 }
 0x290   :  { %3371 = vmatprep.subr.bf16.mxu1 %v4709_v48  ;;  %v2487_v48 = vrot.slane %v2474_v8, %v5080_v29 }
 0x293   :  { %3372 = vmatpush1.bf16.msra.mxu1 %v4707_v33 }
 0x294   :  { %4002 = vmatprep.subr.bf16.mxu1 %v4712_v36 }
 0x2c2   :  { %v2251_v41 = vpop.f32.mrb[4].mxu0 }
 0x2c3   :  { %v4050_v42 = vadd.f32 %v2251_v41, %v417_v39  ;;  %v2253_v43 = vpop.f32.mrb[5].mxu0  ;;  %v3518_v41 = vrot.slane %v3505_v11, %v5080_v29 }
 0x2c4   :  { %v4051_v44 = vadd.f32 %v2253_v43, %v421_v40  ;;  %v2255_v46 = vpop.f32.mrb[6].mxu0 }
 0x2c5   :  { %4736 = vtanh.f32 %v4050_v42  ;;  %v2256_v47 = vpop.f32.mrb[7].mxu0  ;;  %v3530_v46 = vstv %s5116_s7 }
 0x2c6   :  { %4738 = vtanh.f32 %v4051_v44 }
 0x2cf   :  { %v4737_v49 = vpop.eup %4736 }
 0x2d0   :  { %v4739_v50 = vpop.eup %4738  ;;  %v2274_v45 = vmul.f32 %v4737_v49, %v5071_v60 }
 0x2d1   :  { %v2275_v51 = vmul.f32 %v4739_v50, %v5071_v60  ;;  %v4719_v60 = vld [vmem:[#allocation8 + $0x1d0] ss:$12 sps:$4 sm:$0xff]  }
 0x2d2   :  { %v2280_v53 = vpack.c.bf16 %v2274_v45, %v2274_v45 }
 0x2d3   :  { %v2281_v52 = vpack.c.bf16 %v2275_v51, %v2275_v51 }
 0x2d5   :  { %3373 = vmatprep.mubr.bf16.mxu1 %v2281_v52  ;;  %3494 = vmatprep.mubr.bf16.mxu0 %v2281_v52 }
 0x2d6   :  { %3374 = vmatmul.mubr.bf16.vlgmr.msra.gmra.mrb[4].mxu1 %v2280_v53  ;;  %3495 = vmatmul.mubr.bf16.vlgmr.msra.gmra.mrb[12].mxu0 %v2280_v53 }
 0x2d7   :  { %4003 = vmatpush3.bf16.msra.mxu1 %v4713_v32  ;;  %3454 = vmatprep.mubr.bf16.mxu1 %v5076_v7 }
 0x2d8   :  { %4004 = vmatprep.subr.bf16.mxu1 %v4714_v54 }
 0x2db   :  { %4005 = vmatpush3.bf16.msra.mxu1 %v4715_v35 }
 0x2dc   :  { %4006 = vmatprep.subr.bf16.mxu1 %v4716_v55 }
 0x2df   :  { %4007 = vmatpush3.bf16.msra.mxu1 %v4717_v56 }
 0x2e0   :  { %4008 = vmatprep.subr.bf16.mxu1 %v4718_v57 }
 0x2e3   :  { %4009 = vmatpush3.bf16.msra.mxu1 %v4719_v60 }
 0x2e4   :  { %4010 = vmatprep.subr.bf16.mxu1 %v4720_v58 }
 0x2e7   :  { %4011 = vmatpush3.bf16.msra.mxu1 %v4721_v59 }
 0x2e8   :  { %4012 = vmatprep.subr.bf16.mxu1 %v4722_v61 }
 0x2e9   :  { %v3996_v7 = vpop.f32.mrb[8].mxu0 }
 0x2ea   :  { %v3997_v1 = vpop.f32.mrb[9].mxu0 }
 0x2eb   :  { %4013 = vmatpush3.bf16.msra.mxu1 %v4723_v62  ;;  %v3998_v2 = vadd.f32 %v3997_v1, %v3996_v7  ;;  %v3999_v15 = vpop.f32.mrb[10].mxu0 }
 0x2ec   :  { %4014 = vmatprep.subr.bf16.mxu1 %v4724_v63  ;;  %v4000_v4 = vpop.f32.mrb[11].mxu0 }
 0x2ed   :  { %v3417_v34 = vadd.f32 %v3998_v2, %v2487_v48 }
 0x2ef   :  { %4015 = vmatpush3.bf16.msra.mxu1 %v4725_v9 }
 0x2f0   :  { %4016 = vmatprep.subr.bf16.mxu1 %v4726_v3 }
 0x2f3   :  { %4017 = vmatpush3.bf16.msra.mxu1 %v4727_v6 }
 0x2f6   :  { %3455 = vmatmul.mubr.bf16.vlgmr.msra.gmra.mrb[8].mxu1 %v5086_v0 }
 0x3a9   :  { %v3375_v14 = vpop.f32.mrb[4].mxu1  ;;  %v4040_v16 = vpop.f32.mrb[12].mxu0 }
 0x3aa   :  { %v4052_v5 = vadd.f32 %v3375_v14, %v2479_v10  ;;  %v3377_v18 = vpop.f32.mrb[5].mxu1  ;;  %v4041_v30 = vpop.f32.mrb[13].mxu0 }
 0x3ab   :  { %v4053_v20 = vadd.f32 %v3377_v18, %v2483_v12  ;;  %v4042_v22 = vadd.f32 %v4041_v30, %v4040_v16  ;;  %v3379_v23 = vpop.f32.mrb[6].mxu1  ;;  %v4043_v24 = vpop.f32.mrb[14].mxu0 }
 0x3ac   :  { %v3502_v0 = vmax.f32 %v4052_v5, 0.0  ;;  %v3380_v25 = vpop.f32.mrb[7].mxu1  ;;  %v4044_v13 = vpop.f32.mrb[15].mxu0 }
 0x3ad   :  { %v3503_v26 = vmax.f32 %v4053_v20, 0.0 }
 0x3ae   :  { %v3522_v27 = vmul.f32 %v3510_v17, %v3502_v0 }
 0x3af   :  { %v3523_v28 = vmul.f32 %v3514_v21, %v3503_v26 }
 0x3b1   :  { %v3525_v31 = vadd.f32 %v3523_v28, %v3522_v27 }
 0x3c9   :  { %v4018_v33 = vpop.f32.mrb[8].mxu1 }
 0x3ca   :  { %v4019_v36 = vpop.f32.mrb[9].mxu1 }
 0x3cb   :  { %v4020_v37 = vadd.f32 %v4019_v36, %v4018_v33  ;;  %v4021_v38 = vpop.f32.mrb[10].mxu1 }
 0x3cc   :  { %v4022_v39 = vpop.f32.mrb[11].mxu1 }
 0x3cd   :  { %v3457_v40 = vadd.f32 %v4020_v37, %v3417_v34 }
 0x3cf   :  { %v3497_v19 = vadd.f32 %v4042_v22, %v3457_v40 }
 0x3d1   :  { %v3504_v42 = vmax.f32 %v3497_v19, 0.0 }
 0x3d3   :  { %v3524_v43 = vmul.f32 %v3518_v41, %v3504_v42 }
 0x3d5   :  { %v3526_v44 = vadd.f32 %v3525_v31, %v3524_v43 }
 0x3d7   :  { %3527 = vadd.xlane.f32.xlu0 %v3526_v44 }
 0x464   :  { %v3528_v47 = vpop.xlane.xlu0 %3527 }
 0x465   :  { %v3531_v49 = vadd.f32 %v3530_v46, %v3528_v47 }
 0x467   :  { %3533 = vst.msk [vmem:[%s5117_s8] sm:$0xff] %vm3532_vm0, %v3531_v49 }
 0x468   :  { %3538 = vsyncpa [#allocation4], 1 }
 0x469   :  { %3539 = vsyncpa [#allocation6], 1 }
 0x46a   :  { %3540 = vsyncpa [#allocation9], 1 }
 0x46b   :  { %3541 = vsyncpa [#allocation12], 1 }

</bundles_post_ra>
